<compile_context>
chip_gen: v7x
topology: tpu7x:2x2x1
jax: 0.10.0
libtpu: 0.0.40
codegen_flags: <defaults>
</compile_context>

<pallas_src>
import functools

import jax
import jax.numpy as jnp
from jax.experimental import pallas as pl
from jax.experimental.pallas import tpu as pltpu


def _loss_kernel(pred_ref, tgt_ref, trans_ref, out_ref, nll_acc, reg_acc, *,
                 batch_size, mat_diff_loss_scale):
    i = pl.program_id(0)

    @pl.when(i == 0)
    def _init():
        nll_acc[...] = jnp.zeros_like(nll_acc)
        reg_acc[...] = jnp.zeros_like(reg_acc)

    pred = pred_ref[...].astype(jnp.float32)      # (BB, C) log-probs
    tgt = tgt_ref[...]                            # (BB, 1) int32
    BB, C = pred.shape
    K = trans_ref.shape[-1]

    # Validity mask for padded rows in the last chunk.
    row_global = i * BB + jax.lax.broadcasted_iota(jnp.int32, (BB, 1), 0)
    valid = (row_global < batch_size).astype(jnp.float32)          # (BB, 1)

    # ---------------- NLL (sum over valid rows) ----------------
    col = jax.lax.broadcasted_iota(jnp.int32, (BB, C), 1)
    onehot = (col == tgt).astype(jnp.float32)                      # (BB, C)
    nll_rows = -jnp.sum(pred * onehot, axis=1, keepdims=True)      # (BB, 1)
    nll_acc[...] = nll_acc[...] + jnp.sum(nll_rows * valid, keepdims=True)

    # ------- regularizer: ||A A^T - I||^2_F = sum(G^2) - 2*sum(A^2) + K -------
    trans = trans_ref[...]                                         # (BB, K, K)
    gram = jax.lax.dot_general(                                    # MXU, f32 acc
        trans, trans,
        dimension_numbers=(((2,), (2,)), ((0,), (0,))),
        preferred_element_type=jnp.float32,
    )                                                              # (BB, K, K)
    g2 = jnp.sum(jnp.sum(gram * gram, axis=2), axis=1, keepdims=True)    # (BB,1)
    t32 = trans.astype(jnp.float32)                                # widen (v5e VPU)
    a2 = jnp.sum(jnp.sum(t32 * t32, axis=2), axis=1, keepdims=True)      # (BB,1)
    ssq = jnp.maximum(g2 - 2.0 * a2 + jnp.float32(K), 0.0)         # (BB,1)
    fro = jnp.sqrt(ssq)                                            # (BB,1)
    reg_acc[...] = reg_acc[...] + jnp.sum(fro * valid, keepdims=True)

    @pl.when(i == pl.num_programs(0) - 1)
    def _finalize():
        inv_b = jnp.float32(1.0 / batch_size)
        out_ref[...] = (nll_acc[...]
                        + jnp.float32(mat_diff_loss_scale) * reg_acc[...]) * inv_b


def get_loss_pallas(pred, target, trans_feat, mat_diff_loss_scale=0.001,
                    block_b=8):
    """pred: (B, C) log-probs, target: (B,) int, trans_feat: (B, K, K)."""
    B, C = pred.shape
    K = trans_feat.shape[-1]

    if target.dtype != jnp.int32:
        target = target.astype(jnp.int32)
    target2d = target.reshape(B, 1)

    # Pad the batch to a multiple of the chunk size (padded rows are masked).
    bp = pl.cdiv(B, block_b) * block_b
    if bp != B:
        pad = bp - B
        pred = jnp.pad(pred, ((0, pad), (0, 0)))
        target2d = jnp.pad(target2d, ((0, pad), (0, 0)))
        trans_feat = jnp.pad(trans_feat, ((0, pad), (0, 0), (0, 0)))
    nchunks = bp // block_b

    kernel = functools.partial(
        _loss_kernel,
        batch_size=B,
        mat_diff_loss_scale=float(mat_diff_loss_scale),
    )

    cost = pl.CostEstimate(
        flops=2 * bp * K * K * K + 6 * bp * K * K + 4 * bp * C,
        transcendentals=bp,
        bytes_accessed=(pred.size * pred.dtype.itemsize
                        + trans_feat.size * trans_feat.dtype.itemsize
                        + target2d.size * 4 + 4),
    )

    out = pl.pallas_call(
        kernel,
        out_shape=jax.ShapeDtypeStruct((1, 1), jnp.float32),
        grid_spec=pltpu.PrefetchScalarGridSpec(
            num_scalar_prefetch=0,
            grid=(nchunks,),
            in_specs=[
                pl.BlockSpec((block_b, C), lambda i: (i, 0)),      # pred chunk
                pl.BlockSpec((block_b, 1), lambda i: (i, 0)),      # target chunk
                pl.BlockSpec((block_b, K, K), lambda i: (i, 0, 0)),  # trans chunk
            ],
            out_specs=pl.BlockSpec((1, 1), lambda i: (0, 0)),
            scratch_shapes=[
                pltpu.VMEM((1, 1), jnp.float32),   # nll accumulator
                pltpu.VMEM((1, 1), jnp.float32),   # regularizer accumulator
            ],
        ),
        compiler_params=pltpu.CompilerParams(
            dimension_semantics=("arbitrary",)),
        cost_estimate=cost,
    )(pred, target2d, trans_feat)
    return out[0, 0]


def _reference_loss(pred, target, trans_feat, mat_diff_loss_scale=0.001):
    B = pred.shape[0]
    K = trans_feat.shape[1]
    nll = -jnp.mean(pred[jnp.arange(B), target])
    gram = jnp.einsum('bik,bjk->bij', trans_feat, trans_feat)
    reg = jnp.mean(jnp.sqrt(jnp.sum((gram - jnp.eye(K)) ** 2, axis=(1, 2))))
    return nll + mat_diff_loss_scale * reg


if __name__ == "__main__":
    key = jax.random.PRNGKey(0)
    k1, k2, k3 = jax.random.split(key, 3)

    B, C, K = 16, 16, 64  # batch, num_classes, feature-transform dim

    logits = jax.random.normal(k1, (B, C), dtype=jnp.float32)
    pred = jax.nn.log_softmax(logits, axis=-1)          # log-probs (NLL input)
    target = jax.random.randint(k2, (B,), 0, C, dtype=jnp.int32)
    # Feed trans_feat as bf16 to exercise the halved-DMA path; the MXU
    # accumulates in f32 so the gram precision is preserved.
    trans_feat = (0.1 * jax.random.normal(k3, (B, K, K),
                                          dtype=jnp.float32)).astype(jnp.bfloat16)

    total_loss = get_loss_pallas(pred, target, trans_feat,
                                 mat_diff_loss_scale=0.001)
    total_loss = jax.block_until_ready(total_loss)

    ref = _reference_loss(pred, target, trans_feat.astype(jnp.float32),
                          mat_diff_loss_scale=0.001)
    assert jnp.allclose(total_loss, ref, rtol=1e-4, atol=1e-5), (total_loss, ref)

    print("KERNEL_OK")
</pallas_src>

<mosaic_0001>
module attributes {stable_mosaic.version = 11 : i64} {
  func.func @_loss_kernel(%arg0: i32, %arg1: memref<8x16xf32, #tpu.memory_space<vmem>>, %arg2: memref<8x1xi32, #tpu.memory_space<vmem>>, %arg3: memref<8x64x64xbf16, #tpu.memory_space<vmem>>, %arg4: memref<1x1xf32, #tpu.memory_space<vmem>>, %arg5: memref<1x1xf32, #tpu.memory_space<vmem>>, %arg6: memref<1x1xf32, #tpu.memory_space<vmem>>) attributes {dimension_semantics = [#tpu.dimension_semantics<arbitrary>], iteration_bounds = array<i64: 2>, scalar_prefetch = 0 : i64, scratch_operands = 2 : i64, tpu.core_type = #tpu.core_type<tc>, window_params = [{transform_indices = @transform_0, window_bounds = array<i64: 8, 16>}, {transform_indices = @transform_1, window_bounds = array<i64: 8, 1>}, {transform_indices = @transform_2, window_bounds = array<i64: 8, 64, 64>}, {pipeline_mode = #tpu.pipeline_mode<synchronous>, transform_indices = @transform_3, window_bounds = array<i64: 1, 1>}]} {
    %c0_i32 = arith.constant 0 : i32
    %0 = arith.cmpi eq, %arg0, %c0_i32 : i32
    %1 = arith.extui %0 : i1 to i32
    %c0_i32_0 = arith.constant 0 : i32
    %2 = arith.cmpi ne, %1, %c0_i32_0 : i32
    scf.if %2 {
      %cst_27 = arith.constant 0.000000e+00 : f32
      %63 = vector.broadcast %cst_27 : f32 to vector<1x1xf32>
      %c0_28 = arith.constant 0 : index
      %c0_29 = arith.constant 0 : index
      %64 = vector.load %arg5[%c0_28, %c0_29] : memref<1x1xf32, #tpu.memory_space<vmem>>, vector<1x1xf32>
      tpu.vector_store %arg5[%c0_28, %c0_29], %63 {strides = array<i32>} : memref<1x1xf32, #tpu.memory_space<vmem>>, vector<1x1xf32>,
      %cst_30 = arith.constant 0.000000e+00 : f32
      %65 = vector.broadcast %cst_30 : f32 to vector<1x1xf32>
      %c0_31 = arith.constant 0 : index
      %c0_32 = arith.constant 0 : index
      %66 = vector.load %arg6[%c0_31, %c0_32] : memref<1x1xf32, #tpu.memory_space<vmem>>, vector<1x1xf32>
      tpu.vector_store %arg6[%c0_31, %c0_32], %65 {strides = array<i32>} : memref<1x1xf32, #tpu.memory_space<vmem>>, vector<1x1xf32>,
    } else {
    }
    %c0 = arith.constant 0 : index
    %c0_1 = arith.constant 0 : index
    %3 = vector.load %arg1[%c0, %c0_1] : memref<8x16xf32, #tpu.memory_space<vmem>>, vector<8x16xf32>
    %c0_2 = arith.constant 0 : index
    %c0_3 = arith.constant 0 : index
    %4 = vector.load %arg2[%c0_2, %c0_3] : memref<8x1xi32, #tpu.memory_space<vmem>>, vector<8x1xi32>
    %c8_i32 = arith.constant 8 : i32
    %5 = arith.muli %arg0, %c8_i32 : i32
    %6 = tpu.iota {dimensions = array<i32: 0>} : vector<8x1xi32>
    %7 = vector.broadcast %5 : i32 to vector<8x1xi32>
    %8 = arith.addi %7, %6 : vector<8x1xi32>
    %c16_i32 = arith.constant 16 : i32
    %9 = vector.broadcast %c16_i32 : i32 to vector<8x1xi32>
    %10 = arith.cmpi slt, %8, %9 : vector<8x1xi32>
    %11 = arith.extui %10 : vector<8x1xi1> to vector<8x1xi32>
    %12 = arith.sitofp %11 : vector<8x1xi32> to vector<8x1xf32>
    %13 = tpu.iota {dimensions = array<i32: 1>} : vector<8x16xi32>
    %14 = vector.broadcast %4 : vector<8x1xi32> to vector<8x16xi32>
    %15 = arith.cmpi eq, %13, %14 : vector<8x16xi32>
    %16 = arith.extui %15 : vector<8x16xi1> to vector<8x16xi32>
    %17 = arith.sitofp %16 : vector<8x16xi32> to vector<8x16xf32>
    %18 = arith.mulf %3, %17 : vector<8x16xf32>
    %cst = arith.constant dense<0.000000e+00> : vector<8xf32>
    %19 = vector.multi_reduction <add>, %18, %cst [1] : vector<8x16xf32> to vector<8xf32>
    %20 = vector.shape_cast %19 : vector<8xf32> to vector<8x1xf32>
    %cst_4 = arith.constant 0.000000e+00 : f32
    %21 = vector.broadcast %cst_4 : f32 to vector<8x1xf32>
    %22 = arith.subf %21, %20 : vector<8x1xf32>
    %c0_5 = arith.constant 0 : index
    %c0_6 = arith.constant 0 : index
    %23 = vector.load %arg5[%c0_5, %c0_6] : memref<1x1xf32, #tpu.memory_space<vmem>>, vector<1x1xf32>
    %24 = arith.mulf %22, %12 : vector<8x1xf32>
    %25 = vector.shape_cast %24 : vector<8x1xf32> to vector<1x8x1xf32>
    %cst_7 = arith.constant dense<0.000000e+00> : vector<1xf32>
    %26 = vector.multi_reduction <add>, %25, %cst_7 [1, 2] : vector<1x8x1xf32> to vector<1xf32>
    %27 = vector.shape_cast %26 : vector<1xf32> to vector<1x1x1xf32>
    %28 = vector.extract %27[0, 0, 0] : f32 from vector<1x1x1xf32>
    %29 = vector.broadcast %28 : f32 to vector<1x1xf32>
    %30 = arith.addf %23, %29 : vector<1x1xf32>
    %c0_8 = arith.constant 0 : index
    %c0_9 = arith.constant 0 : index
    %31 = vector.load %arg5[%c0_8, %c0_9] : memref<1x1xf32, #tpu.memory_space<vmem>>, vector<1x1xf32>
    tpu.vector_store %arg5[%c0_8, %c0_9], %30 {strides = array<i32>} : memref<1x1xf32, #tpu.memory_space<vmem>>, vector<1x1xf32>,
    %c0_10 = arith.constant 0 : index
    %c0_11 = arith.constant 0 : index
    %c0_12 = arith.constant 0 : index
    %32 = vector.load %arg3[%c0_10, %c0_11, %c0_12] : memref<8x64x64xbf16, #tpu.memory_space<vmem>>, vector<8x64x64xbf16>
    %cst_13 = arith.constant dense<0.000000e+00> : vector<8x64x64xf32>
    %33 = tpu.matmul %32, %32, %cst_13 {dimension_numbers = #tpu.dot_dimension_numbers<[2], [2], [1], [1], [0, 0, 0, 1, 1, 1], [0], [0]>} : vector<8x64x64xbf16>, vector<8x64x64xbf16>, vector<8x64x64xf32> -> vector<8x64x64xf32>
    %34 = arith.mulf %33, %33 : vector<8x64x64xf32>
    %cst_14 = arith.constant dense<0.000000e+00> : vector<8x64xf32>
    %35 = vector.multi_reduction <add>, %34, %cst_14 [2] : vector<8x64x64xf32> to vector<8x64xf32>
    %cst_15 = arith.constant dense<0.000000e+00> : vector<8xf32>
    %36 = vector.multi_reduction <add>, %35, %cst_15 [1] : vector<8x64xf32> to vector<8xf32>
    %37 = vector.shape_cast %36 : vector<8xf32> to vector<8x1xf32>
    %38 = arith.extf %32 : vector<8x64x64xbf16> to vector<8x64x64xf32>
    %39 = arith.mulf %38, %38 : vector<8x64x64xf32>
    %cst_16 = arith.constant dense<0.000000e+00> : vector<8x64xf32>
    %40 = vector.multi_reduction <add>, %39, %cst_16 [2] : vector<8x64x64xf32> to vector<8x64xf32>
    %cst_17 = arith.constant dense<0.000000e+00> : vector<8xf32>
    %41 = vector.multi_reduction <add>, %40, %cst_17 [1] : vector<8x64xf32> to vector<8xf32>
    %42 = vector.shape_cast %41 : vector<8xf32> to vector<8x1xf32>
    %cst_18 = arith.constant 2.000000e+00 : f32
    %43 = vector.broadcast %cst_18 : f32 to vector<8x1xf32>
    %44 = arith.mulf %43, %42 : vector<8x1xf32>
    %45 = arith.subf %37, %44 : vector<8x1xf32>
    %cst_19 = arith.constant 6.400000e+01 : f32
    %46 = vector.broadcast %cst_19 : f32 to vector<8x1xf32>
    %47 = arith.addf %45, %46 : vector<8x1xf32>
    %cst_20 = arith.constant 0.000000e+00 : f32
    %48 = vector.broadcast %cst_20 : f32 to vector<8x1xf32>
    %49 = arith.maximumf %47, %48 : vector<8x1xf32>
    %50 = math.sqrt %49 : vector<8x1xf32>
    %c0_21 = arith.constant 0 : index
    %c0_22 = arith.constant 0 : index
    %51 = vector.load %arg6[%c0_21, %c0_22] : memref<1x1xf32, #tpu.memory_space<vmem>>, vector<1x1xf32>
    %52 = arith.mulf %50, %12 : vector<8x1xf32>
    %53 = vector.shape_cast %52 : vector<8x1xf32> to vector<1x8x1xf32>
    %cst_23 = arith.constant dense<0.000000e+00> : vector<1xf32>
    %54 = vector.multi_reduction <add>, %53, %cst_23 [1, 2] : vector<1x8x1xf32> to vector<1xf32>
    %55 = vector.shape_cast %54 : vector<1xf32> to vector<1x1x1xf32>
    %56 = vector.extract %55[0, 0, 0] : f32 from vector<1x1x1xf32>
    %57 = vector.broadcast %56 : f32 to vector<1x1xf32>
    %58 = arith.addf %51, %57 : vector<1x1xf32>
    %c0_24 = arith.constant 0 : index
    %c0_25 = arith.constant 0 : index
    %59 = vector.load %arg6[%c0_24, %c0_25] : memref<1x1xf32, #tpu.memory_space<vmem>>, vector<1x1xf32>
    tpu.vector_store %arg6[%c0_24, %c0_25], %58 {strides = array<i32>} : memref<1x1xf32, #tpu.memory_space<vmem>>, vector<1x1xf32>,
    %c1_i32 = arith.constant 1 : i32
    %60 = arith.cmpi eq, %arg0, %c1_i32 : i32
    %61 = arith.extui %60 : i1 to i32
    %c0_i32_26 = arith.constant 0 : i32
    %62 = arith.cmpi ne, %61, %c0_i32_26 : i32
    scf.if %62 {
      %c0_27 = arith.constant 0 : index
      %c0_28 = arith.constant 0 : index
      %63 = vector.load %arg5[%c0_27, %c0_28] : memref<1x1xf32, #tpu.memory_space<vmem>>, vector<1x1xf32>
      %c0_29 = arith.constant 0 : index
      %c0_30 = arith.constant 0 : index
      %64 = vector.load %arg6[%c0_29, %c0_30] : memref<1x1xf32, #tpu.memory_space<vmem>>, vector<1x1xf32>
      %cst_31 = arith.constant 1.000000e-03 : f32
      %65 = vector.broadcast %cst_31 : f32 to vector<1x1xf32>
      %66 = arith.mulf %65, %64 : vector<1x1xf32>
      %67 = arith.addf %63, %66 : vector<1x1xf32>
      %cst_32 = arith.constant 6.250000e-02 : f32
      %68 = vector.broadcast %cst_32 : f32 to vector<1x1xf32>
      %69 = arith.mulf %67, %68 : vector<1x1xf32>
      %c0_33 = arith.constant 0 : index
      %c0_34 = arith.constant 0 : index
      %70 = vector.load %arg4[%c0_33, %c0_34] : memref<1x1xf32, #tpu.memory_space<vmem>>, vector<1x1xf32>
      tpu.vector_store %arg4[%c0_33, %c0_34], %69 {strides = array<i32>} : memref<1x1xf32, #tpu.memory_space<vmem>>, vector<1x1xf32>,
    } else {
    }
    return
  }
  func.func @transform_0(%arg0: i32) -> (i32, i32) {
    %c0_i32 = arith.constant 0 : i32
    %c0_i32_0 = arith.constant 0 : i32
    return %arg0, %c0_i32 : i32, i32
  }
  func.func @transform_1(%arg0: i32) -> (i32, i32) {
    %c0_i32 = arith.constant 0 : i32
    %c0_i32_0 = arith.constant 0 : i32
    return %arg0, %c0_i32 : i32, i32
  }
  func.func @transform_2(%arg0: i32) -> (i32, i32, i32) {
    %c0_i32 = arith.constant 0 : i32
    %c0_i32_0 = arith.constant 0 : i32
    %c0_i32_1 = arith.constant 0 : i32
    return %arg0, %c0_i32, %c0_i32_0 : i32, i32, i32
  }
  func.func @transform_3(%arg0: i32) -> (i32, i32) {
    %c0_i32 = arith.constant 0 : i32
    %c0_i32_0 = arith.constant 0 : i32
    %c0_i32_1 = arith.constant 0 : i32
    return %c0_i32, %c0_i32_0 : i32, i32
  }
}

</mosaic_0001>

<bundles_post_ra>
// kernel: tpu_custom_call.1
= control target key start
LH: loop header
LB: loop body
LE: loop exit
PB: predicated region body
PF: predicated region fallthrough
CT: control target
= control target key end

     0   :  { %8 = vsyncpa [#allocation5], 0  ;;  %s4226_s0 = inlined_call_operand.vmem [shape: f32[16,16], index: 0, kind: input, shape index: {}]   ;;  %s4227_s1 = inlined_call_operand.vmem [shape: s32[16,1], index: 1, kind: input, shape index: {}]   ;;  %s4228_s2 = inlined_call_operand.hbm [shape: bf16[16,64,64], index: 2, kind: input, shape index: {}]   ;;  %s4229_s3 = inlined_call_operand.hbm [shape: f32[1,1], index: 3, kind: output, shape index: {}]  }
   0x1   :  { %10 = vsyncpa [#allocation5 + $0x1], 0 }
   0x2   :  { %11 = vsyncpa [#allocation6], 0  ;;  %s3146_s12 = smov 0   ;;  %s3148_s13 = smov 0  }
   0x3   :  { %s3150_s14 = smov 0   ;;  %s3152_s15 = smov 0  }
   0x4 LB: > { %s3165_s16 = sadd.s32 4294967295, %s3117_s15   ;;  %s3168_s17 = sadd.s32 1, %s3117_s15   ;;  %s3117_s15 = sphi %s3152_s15, %s4236_s15   ;;  %s3113_s14 = sphi %s3150_s14, %s4235_s14   ;;  %s3109_s13 = sphi %s3148_s13, %s4234_s13   ;;  %s3105_s12 = sphi %s3146_s12, %s4233_s12  }
   0x5   : > { %s73_s18 = ssub.s32 %s3117_s15, %s3168_s17  ;;  %s76_s19 = sadd.s32 1, %s3113_s14 }
   0x6   : > { %p74_p0 = scmp.eq.s32.totalorder %s73_s18, 0  ;;  %p83_p1 = scmp.ne.s32.totalorder %s3113_s14, %s3109_s13 }
   0x7   : > { %p84_p2 = scmp.eq.s32.totalorder %s3117_s15, 0  ;;  %p89_p3 = scmp.ne.s32.totalorder %s3109_s13, %s3105_s12 }
   0x8   : > { %s3178_s20 = scalar_select %p74_p0, %s3113_s14, %s76_s19  }
   0x9   : > { %p85_p4 = por %p84_p2, %p83_p1  ;;  %p90_p5 = scmp.eq.s32.totalorder %s3165_s16, 0 }
   0xa   : > { %p2915_p6 = scmp.lt.s32.totalorder %s3117_s15, 2  ;;  %s148_s22 = sand.u32 1, %s3113_s14  }
   0xb   : > { %p3182_p7 = por %p90_p5, %p89_p3  ;;  %s2594_s23 = sshll.u32 %s148_s22, 8 }
   0xc   : > { %s2676_s24 = sshll.u32 %s3117_s15, 12  ;;  %s152_s28 = scalar_lea.vmem [#allocation4], %s2594_s23 }
   0xd   : > { %s3191_s27 = scalar_lea.hbm %s4228_s2, %s2676_s24  ;;  %s160_s29 = sshll.u32 %s152_s28, 4  ;;  %s3193_s29 = int_to_ptr.vmem [resolvable:$true] %s160_s29 }
   0xe   : > { %p3195_p8 = pnand %p2915_p6, %p85_p4  ;;  %s3200_s4 = scalar_lea.sflag [#allocation5], %s148_s22 }
   0xf   : > { %s3023_s5 = scalar_lea.hbm %s3191_s27, 4096  ;;  %s3028_s8 = scalar_lea.hbm %s4228_s2, 8192 }
  0x10   : > { %p3024_p10 = scmp.ne.s32.totalorder %s3191_s27, %s3023_s5  ;;  %p3025_p11 = pneg %p3195_p8 }
  0x11   : > { %p3029_p0 = scmp.lt.u32.totalorder %s3191_s27, %s4228_s2  ;;  %p3030_p1 = scmp.lt.u32.totalorder %s3028_s8, %s3023_s5 }
  0x12   : > { %p3026_p12 = pnand %p3025_p11, %p3024_p10  ;;  %p3032_p3 = scmp.lt.u32.totalorder %s3023_s5, %s3191_s27 }
  0x13   : > { %p3031_p2 = por %p3030_p1, %p3029_p0 }
  0x14   : > { %p3027_p13 = pneg %p3026_p12 }
  0x15   : > { %p3033_p4 = por %p3032_p3, %p3031_p2 }
  0x17   : > { %p3034_p5 = pnand %p3033_p4, %p3027_p13 }
  0x19   : > { %3037 = shalt.err (!%p3034_p5)
}
  0x1a   : > { %s3038_s11 = scalar_lea.vmem %s3193_s29, 4096  ;;  %s3119_s12 = smov [#allocation4]  }
  0x1b   : > { %p3039_p6 = scmp.ne.s32.totalorder %s3193_s29, %s3038_s11  ;;  %s3043_s18 = sshll.u32 %s3119_s12, 4  ;;  %s3044_s18 = int_to_ptr.vmem [resolvable:$false] %s3043_s18 }
  0x1c   : > { %s3045_s19 = scalar_lea.vmem %s3044_s18, 8192  ;;  %p3046_p9 = scmp.lt.s32.totalorder %s3193_s29, %s3044_s18 }
  0x1d   : > { %p3041_p10 = pnand %p3039_p6, %p3025_p11  ;;  %p3047_p0 = scmp.lt.s32.totalorder %s3045_s19, %s3038_s11 }
  0x1f   : > { %p3042_p12 = pneg %p3041_p10  ;;  %p3048_p1 = por %p3047_p0, %p3046_p9 }
  0x21   : > { %p3049_p2 = pnand %p3048_p1, %p3042_p12 }
  0x23   : > { %3052 = shalt.err (!%p3049_p2)
}
  0x24   : > { %s3120_s22 = smov 64   ;;  %s3121_s23 = smov 4  }
  0x25   : > { %2914 = dma.hbm_to_vmem [thread:$0]  (!%p3195_p8), %s3191_s27, 4096, %s3193_s29, %s3200_s4, %s3120_s22, %s3120_s22, %s3121_s23  }
  0x26   : > { %p168_p11 = scmp.lt.s32.totalorder %s3117_s15, 3  ;;  %p4232_p13 = scmp.ge.s32.totalorder %s3117_s15, 1 }
  0x28   : > { %p169_p3 = pnand %p4232_p13, %p168_p11 }
  0x29   : > { %s174_s24 = sand.u32 (!%p169_p3), 1, %s3109_s13  }
  0x2a   : > { %172 = sbr.rel (%p169_p3) target bundleno = 1006 (0x3ee), region = 32  ;;  %s2599_s25 = sshll.u32 (!%p169_p3), %s174_s24, 8 }
  0x2b   : > { %s175_s26 = scalar_lea.sflag (!%p169_p3), [#allocation5], %s174_s24  ;;  %s3232_s28 = scalar_lea.vmem (!%p169_p3), [#allocation4], %s2599_s25 }
  0x31   : > { %3096 = dma.done.wait (%p3182_p7), %s175_s26, 4096  }
  0x32   : > { %3098 = vsyncadd (%p3182_p7), %s175_s26, 4294963200  ;;  %p204_p9 = scmp.lt.s32.totalorder %s3165_s16, 1  ;;  %p2602_p8 = scmp.ne.s32.totalorder %s3165_s16, 0 }
  0x33   : > { %vm218_vm0 = vcmask (!%p2602_p8), 0   ;;  %v3122_v0 = vmov (!%p2602_p8), 0.0  }
  0x34   : > { %s205_s27 = scalar_select %p204_p9, %s3165_s16, 1 }
  0x35   : > { %217 = sbr.rel (%p2602_p8) target bundleno = 60 (0x3c), region = 40  ;;  %219 = vst.msk [vmem:[#allocation2] sm:$0x1] (!%p2602_p8), %vm218_vm0, %v3122_v0  ;;  %220 = vst.msk [vmem:[#allocation3] sm:$0x1] (!%p2602_p8), %vm218_vm0, %v3122_v0 }
  0x36   : > { %s2600_s29 = sshll.u32 %s205_s27, 3 }
  0x37   : > { %s3243_s4 = scalar_lea.vmem %s4226_s0, %s2600_s29  ;;  %s3248_s7 = scalar_lea.vmem %s4227_s1, %s2600_s29 }
  0x3c PF: > { %v262_v1 = vld [vmem:[%s3232_s28] sm:$0xff]   ;;  %vm346_vm1 = vcmask 523264   ;;  %v3254_v3 = vld [vmem:[%s3232_s28 + $0x28] sm:$0xff]   ;;  %v3273_v14 = vld [vmem:[%s3232_s28 + $0x30] sm:$0xff]   ;;  %vm1432_vm2 = vcmask 130112   ;;  %vm1439_vm3 = vcmask 195712  }
  0x3d   : > { %v270_v2 = vld [vmem:[%s3232_s28 + $0x20] sm:$0xff]   ;;  %v1767_v4 = vunpack.c.l.bf16 %v262_v1  ;;  %v3257_v5 = vld [vmem:[%s3232_s28 + $0x8] sm:$0xff]   ;;  %v1768_v6 = vunpack.c.h.bf16 %v262_v1  ;;  %2869 = vmatprep.subr.msk.bf16.mxu0 %vm346_vm1, %v262_v1  ;;  %v348_v7 = vsel %vm346_vm1, %v262_v1, 0  ;;  %v3276_v15 = vld [vmem:[%s3232_s28 + $0x10] sm:$0xff]   ;;  %2749 = vmatprep.mubr.msk.bf16.mxu0 %vm346_vm1, %v262_v1  ;;  %v448_v21 = vsel %vm346_vm1, %v3254_v3, 0  ;;  %s2603_s21 = sshll.u32 %s3165_s16, 3 }
  0x3e   : > { %2873 = vmatprep.subr.msk.bf16.mxu1 %vm346_vm1, %v270_v2  ;;  %v445_v8 = vsel %vm346_vm1, %v270_v2, 0  ;;  %v1769_v10 = vunpack.c.l.bf16 %v3257_v5  ;;  %2742 = vmatpush3.bf16.xpose.msra.mxu0 %v348_v7  ;;  %v3265_v12 = vld [vmem:[%s3232_s28 + $0x40] sm:$0xff]   ;;  %v1775_v19 = vunpack.c.l.bf16 %v270_v2  ;;  %v351_v20 = vsel %vm346_vm1, %v3257_v5, 0  ;;  %v3289_v27 = vld [vmem:[%s3232_s28 + $0x48] sm:$0xff]   ;;  %v3298_v32 = vld [vmem:[%s3232_s28 + $0x38] sm:$0xff]   ;;  %p2670_p7 = scmp.ne.s32.totalorder %s3165_s16, 1 }
  0x3f   : > { %v1831_v9 = vmul.f32 %v1767_v4, %v1767_v4  ;;  %2758 = vmatpush3.bf16.xpose.msra.mxu1 %v445_v8  ;;  %v1832_v11 = vmul.f32 %v1768_v6, %v1768_v6  ;;  %2870 = vmatprep.subr.msk.bf16.mxu0 %vm346_vm1, %v3257_v5  ;;  %v1783_v18 = vunpack.c.l.bf16 %v3265_v12  ;;  %v1770_v22 = vunpack.c.h.bf16 %v3257_v5  ;;  %v3302_v34 = vld [vmem:[%s3232_s28 + $0x18] sm:$0xff]   ;;  %v3306_v36 = vld [vmem:[%s3232_s28 + $0x60] sm:$0xff]   ;;  %v3327_v54 = vld [vmem:[%s3232_s28 + $0x68] sm:$0xff]  }
  0x40   : > { %2874 = vmatprep.subr.msk.bf16.mxu1 %vm346_vm1, %v3254_v3  ;;  %v1833_v17 = vmul.f32 %v1769_v10, %v1769_v10  ;;  %2765 = vmatprep.mubr.msk.bf16.mxu1 %vm346_vm1, %v270_v2  ;;  %v1839_v23 = vmul.f32 %v1775_v19, %v1775_v19  ;;  %v1776_v24 = vunpack.c.h.bf16 %v270_v2  ;;  %v1777_v30 = vunpack.c.l.bf16 %v3254_v3  ;;  %v3337_v62 = vld [vmem:[%s3232_s28 + $0x80] sm:$0xff]  }
  0x41   : > { %v1895_v13 = vsel %vm346_vm1, %v1831_v9, 0.0  ;;  %v1898_v16 = vsel %vm346_vm1, %v1832_v11, 0.0  ;;  %v1847_v26 = vmul.f32 %v1783_v18, %v1783_v18  ;;  %v1834_v31 = vmul.f32 %v1770_v22, %v1770_v22 }
  0x42   : > { %1896 = vadd.xlane.f32.xlu0 %v1895_v13  ;;  %v1901_v25 = vsel %vm346_vm1, %v1833_v17, 0.0  ;;  %v1919_v28 = vsel %vm346_vm1, %v1839_v23, 0.0  ;;  %v1840_v29 = vmul.f32 %v1776_v24, %v1776_v24  ;;  %v1785_v33 = vunpack.c.l.bf16 %v3289_v27 }
  0x43   : > { %1920 = vadd.xlane.f32.xlu1 %v1919_v28  ;;  %v1943_v35 = vsel %vm346_vm1, %v1847_v26, 0.0  ;;  %v1841_v38 = vmul.f32 %v1777_v30, %v1777_v30  ;;  %v1784_v39 = vunpack.c.h.bf16 %v3265_v12  ;;  %v354_v40 = vsel %vm346_vm1, %v3276_v15, 0 }
  0x44   : > { %v1922_v37 = vsel %vm346_vm1, %v1840_v29, 0.0  ;;  %v451_v41 = vsel %vm346_vm1, %v3273_v14, 0  ;;  %v1849_v42 = vmul.f32 %v1785_v33, %v1785_v33  ;;  %v1792_v43 = vunpack.c.h.bf16 %v3306_v36  ;;  %v3391_v29 = vld [vmem:[%s3232_s28 + $0xa0] sm:$0xff]  }
  0x45   : > { %v1904_v44 = vsel %vm346_vm1, %v1834_v31, 0.0  ;;  %v1925_v45 = vsel %vm346_vm1, %v1841_v38, 0.0  ;;  %v1848_v46 = vmul.f32 %v1784_v39, %v1784_v39  ;;  %v1778_v47 = vunpack.c.h.bf16 %v3254_v3  ;;  %v3403_v38 = vld [vmem:[%s3232_s28 + $0x58] sm:$0xff]  }
  0x46   : > { %1899 = vadd.xlane.f32.xlu0 %v1898_v16  ;;  %2744 = vmatpush3.bf16.xpose.msra.mxu0 %v351_v20  ;;  %v1949_v48 = vsel %vm346_vm1, %v1849_v42, 0.0  ;;  %v1856_v49 = vmul.f32 %v1792_v43, %v1792_v43  ;;  %v1779_v50 = vunpack.c.l.bf16 %v3273_v14  ;;  %v1791_v53 = vunpack.c.l.bf16 %v3306_v36  ;;  %v3359_v16 = vld [vmem:[%s3232_s28 + $0x50] sm:$0xff]   ;;  %v3376_v20 = vld [vmem:[%s3232_s28 + $0x88] sm:$0xff]  }
  0x47   : > { %2760 = vmatpush3.bf16.xpose.msra.mxu1 %v448_v21  ;;  %2871 = vmatprep.subr.msk.bf16.mxu0 %vm346_vm1, %v3276_v15  ;;  %v1946_v51 = vsel %vm346_vm1, %v1848_v46, 0.0  ;;  %v1842_v52 = vmul.f32 %v1778_v47, %v1778_v47  ;;  %v357_v55 = vsel %vm346_vm1, %v3302_v34, 0  ;;  %v454_v56 = vsel %vm346_vm1, %v3298_v32, 0 }
  0x48   : > { %2875 = vmatprep.subr.msk.bf16.mxu1 %vm346_vm1, %v3273_v14  ;;  %1923 = vadd.xlane.f32.xlu1 %v1922_v37  ;;  %v1970_v57 = vsel %vm346_vm1, %v1856_v49, 0.0  ;;  %v1843_v58 = vmul.f32 %v1779_v50, %v1779_v50  ;;  %v1793_v59 = vunpack.c.l.bf16 %v3327_v54  ;;  %v1855_v61 = vmul.f32 %v1791_v53, %v1791_v53 }
  0x49   : > { %v1928_v60 = vsel %vm346_vm1, %v1842_v52, 0.0  ;;  %v1771_v63 = vunpack.c.l.bf16 %v3276_v15  ;;  %v1800_v2 = vunpack.c.h.bf16 %v3337_v62  ;;  %v542_v7 = vsel %vm346_vm1, %v3265_v12, 0 }
  0x4a   : > { %1902 = vadd.xlane.f32.xlu0 %v1901_v25  ;;  %v1931_v0 = vsel %vm346_vm1, %v1843_v58, 0.0  ;;  %v1857_v1 = vmul.f32 %v1793_v59, %v1793_v59  ;;  %v1967_v4 = vsel %vm346_vm1, %v1855_v61, 0.0  ;;  %v639_v8 = vsel %vm346_vm1, %v3306_v36, 0 }
  0x4b   : > { %v1835_v6 = vmul.f32 %v1771_v63, %v1771_v63  ;;  %v1772_v9 = vunpack.c.h.bf16 %v3276_v15  ;;  %v1864_v11 = vmul.f32 %v1800_v2, %v1800_v2  ;;  %v1786_v13 = vunpack.c.h.bf16 %v3289_v27 }
  0x4c   : > { %1926 = vadd.xlane.f32.xlu1 %v1925_v45  ;;  %v1973_v10 = vsel %vm346_vm1, %v1857_v1, 0.0  ;;  %v1787_v19 = vunpack.c.l.bf16 %v3359_v16  ;;  %v1799_v22 = vunpack.c.l.bf16 %v3337_v62  ;;  %v545_v23 = vsel %vm346_vm1, %v3289_v27, 0 }
  0x4d   : > { %v1907_v17 = vsel %vm346_vm1, %v1835_v6, 0.0  ;;  %v1994_v18 = vsel %vm346_vm1, %v1864_v11, 0.0  ;;  %v1850_v21 = vmul.f32 %v1786_v13, %v1786_v13  ;;  %v1801_v25 = vunpack.c.l.bf16 %v3376_v20 }
  0x4e   : > { %1944 = vadd.xlane.f32.xlu0 %v1943_v35  ;;  %2746 = vmatpush3.bf16.xpose.msra.mxu0 %v354_v40  ;;  %v1851_v26 = vmul.f32 %v1787_v19, %v1787_v19  ;;  %v1863_v30 = vmul.f32 %v1799_v22, %v1799_v22  ;;  %v1780_v31 = vunpack.c.h.bf16 %v3273_v14  ;;  %v3399_v35 = vld [vmem:[%s3232_s28 + $0x78] sm:$0xff]   ;;  %v1808_v37 = vunpack.c.h.bf16 %v3391_v29 }
  0x4f   : > { %2762 = vmatpush3.bf16.xpose.msra.mxu1 %v451_v41  ;;  %2872 = vmatprep.subr.msk.bf16.mxu0 %vm346_vm1, %v3302_v34  ;;  %v1952_v28 = vsel %vm346_vm1, %v1850_v21, 0.0  ;;  %v1865_v33 = vmul.f32 %v1801_v25, %v1801_v25  ;;  %v1794_v41 = vunpack.c.h.bf16 %v3327_v54  ;;  %v548_v42 = vsel %vm346_vm1, %v3359_v16, 0 }
  0x50   : > { %2876 = vmatprep.subr.msk.bf16.mxu1 %vm346_vm1, %v3298_v32  ;;  %1947 = vadd.xlane.f32.xlu1 %v1946_v51  ;;  %v1955_v39 = vsel %vm346_vm1, %v1851_v26, 0.0  ;;  %v1844_v40 = vmul.f32 %v1780_v31, %v1780_v31  ;;  %v1872_v45 = vmul.f32 %v1808_v37, %v1808_v37  ;;  %v1781_v46 = vunpack.c.l.bf16 %v3298_v32  ;;  %v3490_v31 = vld [vmem:[%s3232_s28 + $0xc8] sm:$0xff]  }
  0x51   : > { %v1858_v47 = vmul.f32 %v1794_v41, %v1794_v41  ;;  %v1773_v53 = vunpack.c.l.bf16 %v3302_v34  ;;  %v1788_v1 = vunpack.c.h.bf16 %v3359_v16  ;;  %v1774_v11 = vunpack.c.h.bf16 %v3302_v34 }
  0x52   : > { %1905 = vadd.xlane.f32.xlu0 %v1904_v44  ;;  %v1997_v44 = vsel %vm346_vm1, %v1865_v33, 0.0  ;;  %v1845_v50 = vmul.f32 %v1781_v46, %v1781_v46  ;;  %v1789_v21 = vunpack.c.l.bf16 %v3403_v38  ;;  %v1782_v33 = vunpack.c.h.bf16 %v3298_v32 }
  0x53   : > { %v1976_v51 = vsel %vm346_vm1, %v1858_v47, 0.0  ;;  %v1837_v63 = vmul.f32 %v1773_v53, %v1773_v53  ;;  %vm1446_vm4 = vcmask 261312   ;;  %vm1453_vm5 = vcmask 326912  }
  0x54   : > { %1929 = vadd.xlane.f32.xlu1 %v1928_v60  ;;  %v1937_v59 = vsel %vm346_vm1, %v1845_v50, 0.0  ;;  %v1853_v26 = vmul.f32 %v1789_v21, %v1789_v21  ;;  %v3570_v21 = vld [vmem:[%s3232_s28 + $0xd0] sm:$0xff]   ;;  %vm1460_vm6 = vcmask 392512   ;;  %vm1467_vm7 = vcmask 458112  }
  0x55   : > { %vm1474_vm8 = vcmask 523712   ;;  %vm1749_vm9 = vcmask 1041409   ;;  %vm1751_vm10 = vcmask 1042434   ;;  %vm1753_vm11 = vcmask 1043459  }
  0x56   : > { %1950 = vadd.xlane.f32.xlu0 %v1949_v48  ;;  %2748 = vmatpush3.bf16.xpose.msra.mxu0 %v357_v55  ;;  %v2018_v48 = vsel %vm346_vm1, %v1872_v45, 0.0  ;;  %v3429_v55 = vld [vmem:[%s3232_s28 + $0xa8] sm:$0xff]   ;;  %vm1755_vm12 = vcmask 1044484   ;;  %vm1757_vm13 = vcmask 1045509   ;;  %vm1759_vm14 = vcmask 1046534  }
  0x57   : > { %2764 = vmatpush3.bf16.xpose.msra.mxu1 %v454_v56  ;;  %2877 = vmatprep.subr.msk.bf16.mxu0 %vm346_vm1, %v3265_v12  ;;  %v551_v56 = vsel %vm346_vm1, %v3403_v38, 0  ;;  %v1809_v60 = vunpack.c.l.bf16 %v3429_v55  ;;  %vm1761_vm15 = vcmask 1047559  }
  0x58   : > { %2881 = vmatprep.subr.msk.bf16.mxu1 %vm346_vm1, %v3306_v36  ;;  %1968 = vadd.xlane.f32.xlu1 %v1967_v4 }
  0x59   : > { %v1873_v4 = vmul.f32 %v1809_v60, %v1809_v60 }
  0x5a   : > { %1971 = vadd.xlane.f32.xlu0 %v1970_v57  ;;  %v648_v57 = vsel %vm346_vm1, %v3399_v35, 0 }
  0x5b   : > { %v2021_v13 = vsel %vm346_vm1, %v1873_v4, 0.0 }
  0x5c   : > { %1908 = vadd.xlane.f32.xlu1 %v1907_v17 }
  0x5d   : > { %2750 = vmatmul.mubr.msk.bf16.vlgmr.msra.gmra.mrb[0].mxu0 %vm346_vm1, %v3257_v5  ;;  %v3369_v5 = vld [vmem:[%s3232_s28 + $0x70] sm:$0xff]  }
  0x5e   : > { %1932 = vadd.xlane.f32.xlu0 %v1931_v0  ;;  %2766 = vmatmul.mubr.msk.bf16.vlgmr.msra.gmra.mrb[0].mxu1 %vm346_vm1, %v3254_v3  ;;  %v1836_v3 = vmul.f32 %v1772_v9, %v1772_v9  ;;  %v645_v43 = vsel %vm346_vm1, %v3369_v5, 0  ;;  %v1795_v49 = vunpack.c.l.bf16 %v3369_v5  ;;  %v3439_v0 = vld [vmem:[%s3232_s28 + $0xc0] sm:$0xff]   ;;  %v833_v9 = vsel %vm346_vm1, %v3391_v29, 0 }
  0x5f   : > { %2774 = vmatpush3.bf16.xpose.msra.mxu0 %v542_v7  ;;  %2790 = vmatpush3.bf16.xpose.msra.mxu1 %v639_v8  ;;  %v1816_v6 = vunpack.c.h.bf16 %v3439_v0  ;;  %v1913_v7 = vsel %vm346_vm1, %v1837_v63, 0.0  ;;  %v1852_v8 = vmul.f32 %v1788_v1, %v1788_v1  ;;  %v1790_v1 = vunpack.c.h.bf16 %v3403_v38 }
  0x60   : > { %2882 = vmatprep.subr.msk.bf16.mxu1 %vm346_vm1, %v3327_v54  ;;  %2878 = vmatprep.subr.msk.bf16.mxu0 %vm346_vm1, %v3289_v27  ;;  %v1910_v24 = vsel %vm346_vm1, %v1836_v3, 0.0  ;;  %v1859_v58 = vmul.f32 %v1795_v49, %v1795_v49  ;;  %v1802_v3 = vunpack.c.h.bf16 %v3376_v20  ;;  %v1797_v49 = vunpack.c.l.bf16 %v3399_v35 }
  0x61   : > { %2753 = vmatprep.mubr.msk.bf16.mxu0 %vm346_vm1, %v3276_v15  ;;  %2769 = vmatprep.mubr.msk.bf16.mxu1 %vm346_vm1, %v3273_v14  ;;  %v642_v15 = vsel %vm346_vm1, %v3327_v54, 0  ;;  %v1991_v14 = vsel %vm346_vm1, %v1863_v30, 0.0  ;;  %v1880_v17 = vmul.f32 %v1816_v6, %v1816_v6 }
  0x62   : > { %1974 = vadd.xlane.f32.xlu0 %v1973_v10  ;;  %1953 = vadd.xlane.f32.xlu1 %v1952_v28  ;;  %v1979_v2 = vsel %vm346_vm1, %v1859_v58, 0.0  ;;  %v736_v10 = vsel %vm346_vm1, %v3337_v62, 0  ;;  %v1866_v22 = vmul.f32 %v1802_v3, %v1802_v3  ;;  %v1861_v58 = vmul.f32 %v1797_v49, %v1797_v49 }
  0x63   : > { %v2042_v19 = vsel %vm346_vm1, %v1880_v17, 0.0  ;;  %v1798_v17 = vunpack.c.h.bf16 %v3399_v35 }
  0x64   : > { %v2000_v28 = vsel %vm346_vm1, %v1866_v22, 0.0  ;;  %v1985_v4 = vsel %vm346_vm1, %v1861_v58, 0.0 }
  0x65   : > { %2754 = vmatmul.mubr.msk.bf16.gmra.mrb[4].mxu0 %vm346_vm1, %v3302_v34  ;;  %v1838_v34 = vmul.f32 %v1774_v11, %v1774_v11  ;;  %v930_v11 = vsel %vm346_vm1, %v3439_v0, 0 }
  0x66   : > { %1995 = vadd.xlane.f32.xlu0 %v1994_v18  ;;  %2770 = vmatmul.mubr.msk.bf16.gmra.mrb[4].mxu1 %vm346_vm1, %v3298_v32  ;;  %v1958_v18 = vsel %vm346_vm1, %v1852_v8, 0.0  ;;  %v1961_v32 = vsel %vm346_vm1, %v1853_v26, 0.0 }
  0x67   : > { %2776 = vmatpush3.bf16.xpose.msra.mxu0 %v545_v23  ;;  %2792 = vmatpush3.bf16.xpose.msra.mxu1 %v642_v15  ;;  %v1815_v23 = vunpack.c.l.bf16 %v3439_v0  ;;  %v836_v15 = vsel %vm346_vm1, %v3429_v55, 0 }
  0x68   : > { %2883 = vmatprep.subr.msk.bf16.mxu1 %vm346_vm1, %v3369_v5  ;;  %2879 = vmatprep.subr.msk.bf16.mxu0 %vm346_vm1, %v3359_v16 }
  0x69   : > { %2797 = vmatprep.mubr.msk.bf16.mxu1 %vm346_vm1, %v3306_v36  ;;  %2781 = vmatprep.mubr.msk.bf16.mxu0 %vm346_vm1, %v3265_v12  ;;  %v1934_v36 = vsel %vm346_vm1, %v1844_v40, 0.0  ;;  %v1807_v12 = vunpack.c.l.bf16 %v3391_v29  ;;  %v1879_v30 = vmul.f32 %v1815_v23, %v1815_v23  ;;  %v3502_v40 = vld [vmem:[%s3232_s28 + $0x98] sm:$0xff]  }
  0x6a   : > { %1911 = vadd.xlane.f32.xlu0 %v1910_v24  ;;  %1992 = vadd.xlane.f32.xlu1 %v1991_v14  ;;  %v1916_v24 = vsel %vm346_vm1, %v1838_v34, 0.0  ;;  %v1817_v14 = vunpack.c.l.bf16 %v3490_v31 }
  0x6b   : > { %v1871_v52 = vmul.f32 %v1807_v12, %v1807_v12  ;;  %v2039_v41 = vsel %vm346_vm1, %v1879_v30, 0.0 }
  0x6c   : > { %v1881_v47 = vmul.f32 %v1817_v14, %v1817_v14  ;;  %v3596_v14 = vld [vmem:[%s3232_s28 + $0xf8] sm:$0xff]  }
  0x6d   : > { %v2015_v61 = vsel %vm346_vm1, %v1871_v52, 0.0 }
  0x6e   : > { %1956 = vadd.xlane.f32.xlu0 %v1955_v39  ;;  %1935 = vadd.xlane.f32.xlu1 %v1934_v36  ;;  %v3498_v39 = vld [vmem:[%s3232_s28 + $0xb8] sm:$0xff]  }
  0x6f   : > { %2778 = vmatpush3.bf16.xpose.msra.mxu0 %v548_v42  ;;  %2794 = vmatpush3.bf16.xpose.msra.mxu1 %v645_v43  ;;  %v1846_v42 = vmul.f32 %v1782_v33, %v1782_v33  ;;  %v1796_v43 = vunpack.c.h.bf16 %v3369_v5  ;;  %v1819_v33 = vunpack.c.l.bf16 %v3570_v21 }
  0x70   : > { %2884 = vmatprep.subr.msk.bf16.mxu1 %vm346_vm1, %v3399_v35  ;;  %2880 = vmatprep.subr.msk.bf16.mxu0 %vm346_vm1, %v3403_v38 }
  0x71   : > { %v1860_v12 = vmul.f32 %v1796_v43, %v1796_v43 }
  0x72   : > { %1998 = vadd.xlane.f32.xlu0 %v1997_v44  ;;  %1977 = vadd.xlane.f32.xlu1 %v1976_v51  ;;  %v3512_v44 = vld [vmem:[%s3232_s28 + $0xe0] sm:$0xff]  }
  0x73   : > { %v1982_v51 = vsel %vm346_vm1, %v1860_v12, 0.0  ;;  %v1823_v53 = vunpack.c.l.bf16 %v3512_v44 }
  0x75   : > { %v1887_v63 = vmul.f32 %v1823_v53, %v1823_v53  ;;  %v1036_v53 = vsel %vm346_vm1, %v3596_v14, 0 }
  0x76   : > { %2019 = vadd.xlane.f32.xlu0 %v2018_v48  ;;  %2016 = vadd.xlane.f32.xlu1 %v2015_v61  ;;  %v2045_v48 = vsel %vm346_vm1, %v1881_v47, 0.0  ;;  %v936_v47 = vsel %vm346_vm1, %v3570_v21, 0 }
  0x77   : > { %2780 = vmatpush3.bf16.xpose.msra.mxu0 %v551_v56  ;;  %2796 = vmatpush3.bf16.xpose.msra.mxu1 %v648_v57  ;;  %v842_v56 = vsel %vm346_vm1, %v3498_v39, 0  ;;  %v745_v57 = vsel %vm346_vm1, %v3502_v40, 0 }
  0x78   : > { %2889 = vmatprep.subr.msk.bf16.mxu1 %vm346_vm1, %v3391_v29  ;;  %2885 = vmatprep.subr.msk.bf16.mxu0 %vm346_vm1, %v3337_v62 }
  0x7a   : > { %1938 = vadd.xlane.f32.xlu0 %v1937_v59  ;;  %1914 = vadd.xlane.f32.xlu1 %v1913_v7  ;;  %v2063_v7 = vsel %vm346_vm1, %v1887_v63, 0.0 }
  0x7e   : > { %1980 = vadd.xlane.f32.xlu0 %v1979_v2  ;;  %2798 = vmatmul.mubr.msk.bf16.vlgmr.msra.gmra.mrb[8].mxu1 %vm346_vm1, %v3327_v54  ;;  %v3471_v54 = vld [vmem:[%s3232_s28 + $0x90] sm:$0xff]   ;;  %v3539_v2 = vld [vmem:[%s3232_s28 + $0xe8] sm:$0xff]  }
  0x7f   : > { %2782 = vmatmul.mubr.msk.bf16.vlgmr.msra.gmra.mrb[8].mxu0 %vm346_vm1, %v3289_v27  ;;  %2822 = vmatpush3.bf16.xpose.msra.mxu1 %v833_v9  ;;  %v3468_v27 = vld [vmem:[%s3232_s28 + $0xb0] sm:$0xff]   ;;  %v1803_v25 = vunpack.c.l.bf16 %v3471_v54  ;;  %v742_v46 = vsel %vm346_vm1, %v3471_v54, 0  ;;  %v1825_v8 = vunpack.c.l.bf16 %v3539_v2  ;;  %v1804_v9 = vunpack.c.h.bf16 %v3471_v54 }
  0x80   : > { %2806 = vmatpush3.bf16.xpose.msra.mxu0 %v736_v10  ;;  %2890 = vmatprep.subr.msk.bf16.mxu1 %vm346_vm1, %v3429_v55  ;;  %v839_v45 = vsel %vm346_vm1, %v3468_v27, 0  ;;  %v1811_v59 = vunpack.c.l.bf16 %v3468_v27  ;;  %v1027_v10 = vsel %vm346_vm1, %v3512_v44, 0 }
  0x81   : > { %2886 = vmatprep.subr.msk.bf16.mxu0 %vm346_vm1, %v3376_v20  ;;  %2785 = vmatprep.mubr.msk.bf16.mxu0 %vm346_vm1, %v3359_v16  ;;  %v739_v16 = vsel %vm346_vm1, %v3376_v20, 0  ;;  %v1867_v37 = vmul.f32 %v1803_v25, %v1803_v25  ;;  %v1889_v3 = vmul.f32 %v1825_v8, %v1825_v8  ;;  %v1868_v34 = vmul.f32 %v1804_v9, %v1804_v9 }
  0x82   : > { %2022 = vadd.xlane.f32.xlu0 %v2021_v13  ;;  %2801 = vmatprep.mubr.msk.bf16.mxu1 %vm346_vm1, %v3369_v5  ;;  %v1824_v5 = vunpack.c.h.bf16 %v3512_v44  ;;  %v1875_v6 = vmul.f32 %v1811_v59, %v1811_v59  ;;  %v933_v25 = vsel %vm346_vm1, %v3490_v31, 0 }
  0x83   : > { %1959 = vadd.xlane.f32.xlu1 %v1958_v18  ;;  %v2003_v36 = vsel %vm346_vm1, %v1867_v37, 0.0  ;;  %v2069_v22 = vsel %vm346_vm1, %v1889_v3, 0.0  ;;  %v2006_v23 = vsel %vm346_vm1, %v1868_v34, 0.0 }
  0x84   : > { %v1888_v50 = vmul.f32 %v1824_v5, %v1824_v5  ;;  %v2027_v13 = vsel %vm346_vm1, %v1875_v6, 0.0  ;;  %v1829_v6 = vunpack.c.l.bf16 %v3596_v14 }
  0x86   : > { %2043 = vadd.xlane.f32.xlu0 %v2042_v19  ;;  %2802 = vmatmul.mubr.msk.bf16.gmra.mrb[12].mxu1 %vm346_vm1, %v3399_v35  ;;  %v2066_v60 = vsel %vm346_vm1, %v1888_v50, 0.0  ;;  %v1818_v19 = vunpack.c.h.bf16 %v3490_v31  ;;  %v1862_v35 = vmul.f32 %v1798_v17, %v1798_v17 }
  0x87   : > { %2786 = vmatmul.mubr.msk.bf16.gmra.mrb[12].mxu0 %vm346_vm1, %v3403_v38  ;;  %2824 = vmatpush3.bf16.xpose.msra.mxu1 %v836_v15  ;;  %v1854_v38 = vmul.f32 %v1790_v1, %v1790_v1 }
  0x88   : > { %2808 = vmatpush3.bf16.xpose.msra.mxu0 %v739_v16  ;;  %2891 = vmatprep.subr.msk.bf16.mxu1 %vm346_vm1, %v3468_v27  ;;  %v1882_v15 = vmul.f32 %v1818_v19, %v1818_v19  ;;  %v1805_v16 = vunpack.c.l.bf16 %v3502_v40  ;;  %v1988_v26 = vsel %vm346_vm1, %v1862_v35, 0.0 }
  0x89   : > { %2887 = vmatprep.subr.msk.bf16.mxu0 %vm346_vm1, %v3471_v54  ;;  %2001 = vadd.xlane.f32.xlu1 %v2000_v28  ;;  %v1964_v18 = vsel %vm346_vm1, %v1854_v38, 0.0  ;;  %v1826_v28 = vunpack.c.h.bf16 %v3539_v2  ;;  %v1893_v38 = vmul.f32 %v1829_v6, %v1829_v6 }
  0x8a   : > { %1917 = vadd.xlane.f32.xlu0 %v1916_v24  ;;  %2829 = vmatprep.mubr.msk.bf16.mxu1 %vm346_vm1, %v3391_v29  ;;  %v1940_v29 = vsel %vm346_vm1, %v1846_v42, 0.0  ;;  %v1030_v24 = vsel %vm346_vm1, %v3539_v2, 0  ;;  %v1869_v30 = vmul.f32 %v1805_v16, %v1805_v16 }
  0x8b   : > { %2813 = vmatprep.mubr.msk.bf16.mxu0 %vm346_vm1, %v3337_v62  ;;  %v1810_v62 = vunpack.c.h.bf16 %v3429_v55  ;;  %v1890_v37 = vmul.f32 %v1826_v28, %v1826_v28 }
  0x8c   : > { %v2009_v43 = vsel %vm346_vm1, %v1869_v30, 0.0 }
  0x8d   : > { %2040 = vadd.xlane.f32.xlu1 %v2039_v41  ;;  %v1874_v52 = vmul.f32 %v1810_v62, %v1810_v62  ;;  %v3600_v41 = vld [vmem:[%s3232_s28 + $0xd8] sm:$0xff]  }
  0x8e   : > { %1962 = vadd.xlane.f32.xlu0 %v1961_v32  ;;  %v1813_v32 = vunpack.c.l.bf16 %v3498_v39 }
  0x8f   : > { %2826 = vmatpush3.bf16.xpose.msra.mxu1 %v839_v45  ;;  %v2024_v61 = vsel %vm346_vm1, %v1874_v52, 0.0  ;;  %v1883_v45 = vmul.f32 %v1819_v33, %v1819_v33  ;;  %v1821_v52 = vunpack.c.l.bf16 %v3600_v41 }
  0x90   : > { %2810 = vmatpush3.bf16.xpose.msra.mxu0 %v742_v46  ;;  %2892 = vmatprep.subr.msk.bf16.mxu1 %vm346_vm1, %v3498_v39  ;;  %v1806_v46 = vunpack.c.h.bf16 %v3502_v40  ;;  %v1877_v5 = vmul.f32 %v1813_v32, %v1813_v32 }
  0x91   : > { %2888 = vmatprep.subr.msk.bf16.mxu0 %vm346_vm1, %v3502_v40  ;;  %1941 = vadd.xlane.f32.xlu1 %v1940_v29  ;;  %v2072_v29 = vsel %vm346_vm1, %v1890_v37, 0.0  ;;  %v2051_v12 = vsel %vm346_vm1, %v1883_v45, 0.0 }
  0x92   : > { %2004 = vadd.xlane.f32.xlu0 %v2003_v36  ;;  %v1870_v62 = vmul.f32 %v1806_v46, %v1806_v46 }
  0x94   : > { %v2012_v50 = vsel %vm346_vm1, %v1870_v62, 0.0 }
  0x95   : > { %1983 = vadd.xlane.f32.xlu1 %v1982_v51 }
  0x96   : > { %2046 = vadd.xlane.f32.xlu0 %v2045_v48  ;;  %v1814_v48 = vunpack.c.h.bf16 %v3498_v39 }
  0x97   : > { %2828 = vmatpush3.bf16.xpose.msra.mxu1 %v842_v56  ;;  %v939_v56 = vsel %vm346_vm1, %v3600_v41, 0 }
  0x98   : > { %2812 = vmatpush3.bf16.xpose.msra.mxu0 %v745_v57  ;;  %2897 = vmatprep.subr.msk.bf16.mxu1 %vm346_vm1, %v3512_v44  ;;  %v1878_v57 = vmul.f32 %v1814_v48, %v1814_v48 }
  0x99   : > { %2893 = vmatprep.subr.msk.bf16.mxu0 %vm346_vm1, %v3439_v0  ;;  %2025 = vadd.xlane.f32.xlu1 %v2024_v61  ;;  %v1822_v61 = vunpack.c.h.bf16 %v3600_v41 }
  0x9a   : > { %2067 = vadd.xlane.f32.xlu0 %v2066_v60  ;;  %v1885_v60 = vmul.f32 %v1821_v52, %v1821_v52  ;;  %v2036_v63 = vsel %vm346_vm1, %v1878_v57, 0.0 }
  0x9d   : > { %2064 = vadd.xlane.f32.xlu1 %v2063_v7  ;;  %v1886_v7 = vmul.f32 %v1822_v61, %v1822_v61 }
  0x9e   : > { %1986 = vadd.xlane.f32.xlu0 %v1985_v4  ;;  %2830 = vmatmul.mubr.msk.bf16.vlgmr.msra.gmra.mrb[16].mxu1 %vm346_vm1, %v3429_v55  ;;  %v3566_v55 = vld [vmem:[%s3232_s28 + $0xf0] sm:$0xff]   ;;  %v2057_v4 = vsel %vm346_vm1, %v1885_v60, 0.0 }
  0x9f   : > { %2814 = vmatmul.mubr.msk.bf16.vlgmr.msra.gmra.mrb[16].mxu0 %vm346_vm1, %v3376_v20  ;;  %2854 = vmatpush3.bf16.xpose.msra.mxu1 %v1027_v10  ;;  %v1812_v20 = vunpack.c.h.bf16 %v3468_v27  ;;  %v1033_v36 = vsel %vm346_vm1, %v3566_v55, 0  ;;  %v1828_v58 = vunpack.c.h.bf16 %v3566_v55  ;;  %v2060_v9 = vsel %vm346_vm1, %v1886_v7, 0.0 }
  0xa0   : > { %2838 = vmatpush3.bf16.xpose.msra.mxu0 %v930_v11  ;;  %2898 = vmatprep.subr.msk.bf16.mxu1 %vm346_vm1, %v3539_v2  ;;  %v1830_v10 = vunpack.c.h.bf16 %v3596_v14 }
  0xa1   : > { %2894 = vmatprep.subr.msk.bf16.mxu0 %vm346_vm1, %v3490_v31  ;;  %1965 = vadd.xlane.f32.xlu1 %v1964_v18  ;;  %v1892_v1 = vmul.f32 %v1828_v58, %v1828_v58 }
  0xa2   : > { %2028 = vadd.xlane.f32.xlu0 %v2027_v13  ;;  %2817 = vmatprep.mubr.msk.bf16.mxu0 %vm346_vm1, %v3471_v54  ;;  %v1876_v54 = vmul.f32 %v1812_v20, %v1812_v20  ;;  %v1894_v11 = vmul.f32 %v1830_v10, %v1830_v10 }
  0xa3   : > { %2833 = vmatprep.mubr.msk.bf16.mxu1 %vm346_vm1, %v3468_v27  ;;  %v2048_v27 = vsel %vm346_vm1, %v1882_v15, 0.0  ;;  %v2078_v8 = vsel %vm346_vm1, %v1892_v1, 0.0 }
  0xa4   : > { %v2030_v42 = vsel %vm346_vm1, %v1876_v54, 0.0  ;;  %v2084_v13 = vsel %vm346_vm1, %v1894_v11, 0.0 }
  0xa5   : > { %2007 = vadd.xlane.f32.xlu1 %v2006_v23 }
  0xa6   : > { %2070 = vadd.xlane.f32.xlu0 %v2069_v22  ;;  %2834 = vmatmul.mubr.msk.bf16.gmra.mrb[20].mxu1 %vm346_vm1, %v3498_v39 }
  0xa7   : > { %2818 = vmatmul.mubr.msk.bf16.gmra.mrb[20].mxu0 %vm346_vm1, %v3502_v40  ;;  %2856 = vmatpush3.bf16.xpose.msra.mxu1 %v1030_v24  ;;  %v1820_v40 = vunpack.c.h.bf16 %v3570_v21 }
  0xa8   : > { %2840 = vmatpush3.bf16.xpose.msra.mxu0 %v933_v25  ;;  %2899 = vmatprep.subr.msk.bf16.mxu1 %vm346_vm1, %v3566_v55 }
  0xa9   : > { %2895 = vmatprep.subr.msk.bf16.mxu0 %vm346_vm1, %v3570_v21  ;;  %2049 = vadd.xlane.f32.xlu1 %v2048_v27  ;;  %v1884_v51 = vmul.f32 %v1820_v40, %v1820_v40 }
  0xaa   : > { %1989 = vadd.xlane.f32.xlu0 %v1988_v26  ;;  %2861 = vmatprep.mubr.msk.bf16.mxu1 %vm346_vm1, %v3512_v44  ;;  %v1827_v44 = vunpack.c.l.bf16 %v3566_v55 }
  0xab   : > { %2845 = vmatprep.mubr.msk.bf16.mxu0 %vm346_vm1, %v3439_v0  ;;  %v2033_v0 = vsel %vm346_vm1, %v1877_v5, 0.0  ;;  %v2054_v39 = vsel %vm346_vm1, %v1884_v51, 0.0 }
  0xac   : > { %v1891_v49 = vmul.f32 %v1827_v44, %v1827_v44 }
  0xad   : > { %2010 = vadd.xlane.f32.xlu1 %v2009_v43 }
  0xae   : > { %2031 = vadd.xlane.f32.xlu0 %v2030_v42  ;;  %v2075_v59 = vsel %vm346_vm1, %v1891_v49, 0.0 }
  0xaf   : > { %2858 = vmatpush3.bf16.xpose.msra.mxu1 %v1033_v36  ;;  %v224_v36 = vlaneseq }
  0xb0   : > { %2842 = vmatpush3.bf16.xpose.msra.mxu0 %v936_v47  ;;  %2900 = vmatprep.subr.msk.bf16.mxu1 %vm346_vm1, %v3596_v14 }
  0xb1   : > { %2896 = vmatprep.subr.msk.bf16.mxu0 %vm346_vm1, %v3600_v41  ;;  %2052 = vadd.xlane.f32.xlu1 %v2051_v12  ;;  %v3709_v5 = vand.u32 127, %v224_v36  ;;  %v3715_v62 = vshrl.u32 %v224_v36, 7 }
  0xb2   : > { %2073 = vadd.xlane.f32.xlu0 %v2072_v29 }
  0xb3   : > { %v1427_v40 = vadd.s32 4294967288, %v3709_v5  ;;  %v1434_v49 = vadd.s32 4294967280, %v3709_v5  ;;  %v1441_v57 = vadd.s32 4294967272, %v3709_v5  ;;  %v1448_v61 = vadd.s32 4294967264, %v3709_v5 }
  0xb4   : > { %v1455_v10 = vadd.s32 4294967256, %v3709_v5 }
  0xb5   : > { %2013 = vadd.xlane.f32.xlu1 %v2012_v50  ;;  %v3725_v50 = vsub.s32 %v3709_v5, %v3715_v62  ;;  %v3728_v51 = vsub.s32 %v1427_v40, %v3715_v62  ;;  %v3750_v6 = vsub.s32 %v1441_v57, %v3715_v62  ;;  %v3762_v11 = vsub.s32 %v1448_v61, %v3715_v62 }
  0xb6   : > { %2034 = vadd.xlane.f32.xlu0 %v2033_v0  ;;  %v3782_v40 = vsub.s32 %v1455_v10, %v3715_v62  ;;  %v1462_v57 = vadd.s32 4294967248, %v3709_v5 }
  0xb7   : > { %2860 = vmatpush3.bf16.xpose.msra.mxu1 %v1036_v53 }
  0xb8   : > { %2844 = vmatpush3.bf16.xpose.msra.mxu0 %v939_v56  ;;  %v3735_v56 = vsub.s32 %v1434_v49, %v3715_v62 }
  0xb9   : > { %2055 = vadd.xlane.f32.xlu1 %v2054_v39 }
  0xba   : > { %2076 = vadd.xlane.f32.xlu0 %v2075_v59 }
  0xbd   : > { %2058 = vadd.xlane.f32.xlu1 %v2057_v4 }
  0xbe   : > { %2037 = vadd.xlane.f32.xlu0 %v2036_v63  ;;  %2862 = vmatmul.mubr.msk.bf16.vlgmr.msra.gmra.mrb[24].mxu1 %vm346_vm1, %v3539_v2  ;;  %v2081_v2 = vsel %vm346_vm1, %v1893_v38, 0.0 }
  0xbf   : > { %2846 = vmatmul.mubr.msk.bf16.vlgmr.msra.gmra.mrb[24].mxu0 %vm346_vm1, %v3490_v31  ;;  %2865 = vmatprep.mubr.msk.bf16.mxu1 %vm346_vm1, %v3566_v55 }
  0xc0   : > { %2849 = vmatprep.mubr.msk.bf16.mxu0 %vm346_vm1, %v3570_v21 }
  0xc1   : > { %2061 = vadd.xlane.f32.xlu1 %v2060_v9 }
  0xc2   : > { %2079 = vadd.xlane.f32.xlu0 %v2078_v8 }
  0xc6   : > { %2082 = vadd.xlane.f32.xlu0 %v2081_v2  ;;  %2866 = vmatmul.mubr.msk.bf16.gmra.mrb[28].mxu1 %vm346_vm1, %v3596_v14 }
  0xc7   : > { %2850 = vmatmul.mubr.msk.bf16.gmra.mrb[28].mxu0 %vm346_vm1, %v3600_v41 }
  0xca   : > { %2085 = vadd.xlane.f32.xlu0 %v2084_v13 }
  0xcf   : > { %v1897_v31 = vpop.xlane.xlu0 %1896 }
  0xd0   : > { %v1921_v18 = vpop.xlane.xlu1 %1920  ;;  %v2154_v58 = vrot.slane %v1897_v31, %v3725_v50 }
  0xd1   : > { %v2193_v39 = vrot.slane %v1921_v18, %v3725_v50 }
  0xd3   : > { %v1900_v17 = vpop.xlane.xlu0 %1899 }
  0xd4   : > { %v2158_v59 = vrot.slane %v1900_v17, %v3728_v51 }
  0xd5   : > { %v1924_v19 = vpop.xlane.xlu1 %1923 }
  0xd6   : > { %v2197_v60 = vrot.slane %v1924_v19, %v3728_v51  ;;  %v2159_v7 = vsel %vm1432_vm2, %v2158_v59, %v2154_v58  ;;  %v1469_v58 = vadd.s32 4294967240, %v3709_v5 }
  0xd7   : > { %v3653_v3 = vpop.xlane.xlu0 %1902 }
  0xd8   : > { %v2163_v4 = vrot.slane %v3653_v3, %v3735_v56  ;;  %v2198_v2 = vsel %vm1432_vm2, %v2197_v60, %v2193_v39 }
  0xd9   : > { %v3659_v55 = vpop.xlane.xlu1 %1926 }
  0xda   : > { %v2202_v9 = vrot.slane %v3659_v55, %v3735_v56  ;;  %v2164_v17 = vsel %vm1439_vm3, %v2163_v4, %v2159_v7 }
  0xdb   : > { %v3655_v34 = vpop.xlane.xlu0 %1944 }
  0xdc   : > { %v2232_v8 = vrot.slane %v3655_v34, %v3725_v50  ;;  %v2203_v36 = vsel %vm1439_vm3, %v2202_v9, %v2198_v2 }
  0xdd   : > { %v3663_v21 = vpop.xlane.xlu1 %1947 }
  0xde   : > { %v2236_v38 = vrot.slane %v3663_v21, %v3728_v51 }
  0xdf   : > { %v3657_v35 = vpop.xlane.xlu0 %1905 }
  0xe0   : > { %v2168_v3 = vrot.slane %v3657_v35, %v3750_v6  ;;  %v2237_v19 = vsel %vm1432_vm2, %v2236_v38, %v2232_v8  ;;  %v3815_v38 = vsub.s32 %v1462_v57, %v3715_v62 }
  0xe1   : > { %v3667_v23 = vpop.xlane.xlu1 %1929 }
  0xe2   : > { %v2207_v55 = vrot.slane %v3667_v23, %v3750_v6  ;;  %v2169_v23 = vsel %vm1446_vm4, %v2168_v3, %v2164_v17 }
  0xe3   : > { %v3661_v20 = vpop.xlane.xlu0 %1950 }
  0xe4   : > { %v2241_v18 = vrot.slane %v3661_v20, %v3735_v56 }
  0xe5   : > { %v3671_v16 = vpop.xlane.xlu1 %1968 }
  0xe6   : > { %v2271_v21 = vrot.slane %v3671_v16, %v3725_v50  ;;  %v2242_v16 = vsel %vm1439_vm3, %v2241_v18, %v2237_v19 }
  0xe7   : > { %v3665_v22 = vpop.xlane.xlu0 %1971 }
  0xe8   : > { %v2275_v34 = vrot.slane %v3665_v22, %v3728_v51 }
  0xe9   : > { %v3675_v25 = vpop.xlane.xlu1 %1908 }
  0xea   : > { %v2173_v35 = vrot.slane %v3675_v25, %v3762_v11  ;;  %v2276_v39 = vsel %vm1432_vm2, %v2275_v34, %v2271_v21 }
  0xeb   : > { %v3669_v15 = vpop.xlane.xlu0 %1932 }
  0xec   : > { %v2212_v59 = vrot.slane %v3669_v15, %v3762_v11  ;;  %v2174_v15 = vsel %vm1453_vm5, %v2173_v35, %v2169_v23 }
  0xef   : > { %v3673_v24 = vpop.xlane.xlu0 %1974  ;;  %v3681_v54 = vpop.xlane.xlu1 %1953 }
  0xf0   : > { %v2246_v20 = vrot.slane %v3681_v54, %v3750_v6  ;;  %v2280_v25 = vrot.slane %v3673_v24, %v3735_v56  ;;  %v2208_v54 = vsel %vm1446_vm4, %v2207_v55, %v2203_v36 }
  0xf2   : > { %v2247_v24 = vsel %vm1446_vm4, %v2246_v20, %v2242_v16  ;;  %v2281_v9 = vsel %vm1439_vm3, %v2280_v25, %v2276_v39 }
  0xf3   : > { %v3677_v26 = vpop.xlane.xlu0 %1995 }
  0xf4   : > { %v2314_v60 = vrot.slane %v3677_v26, %v3728_v51 }
  0xf7   : > { %v3679_v28 = vpop.xlane.xlu0 %1911  ;;  %v3685_v30 = vpop.xlane.xlu1 %1992 }
  0xf8   : > { %v2178_v61 = vrot.slane %v3679_v28, %v3782_v40  ;;  %v2310_v7 = vrot.slane %v3685_v30, %v3725_v50  ;;  %v3824_v30 = vsub.s32 %v1469_v58, %v3715_v62 }
  0xfa   : > { %v2315_v10 = vsel %vm1432_vm2, %v2314_v60, %v2310_v7  ;;  %v2179_v17 = vsel %vm1460_vm6, %v2178_v61, %v2174_v15 }
  0xfb   : > { %v3683_v27 = vpop.xlane.xlu0 %1956  ;;  %v3689_v37 = vpop.xlane.xlu1 %1935 }
  0xfc   : > { %v2251_v4 = vrot.slane %v3683_v27, %v3762_v11  ;;  %v2217_v26 = vrot.slane %v3689_v37, %v3782_v40  ;;  %v2213_v27 = vsel %vm1453_vm5, %v2212_v59, %v2208_v54 }
  0xfe   : > { %v2252_v3 = vsel %vm1453_vm5, %v2251_v4, %v2247_v24  ;;  %v2218_v23 = vsel %vm1460_vm6, %v2217_v26, %v2213_v27 }
  0xff   : > { %v3687_v33 = vpop.xlane.xlu0 %1998  ;;  %v3693_v32 = vpop.xlane.xlu1 %1977 }
 0x100   : > { %v2285_v2 = vrot.slane %v3693_v32, %v3750_v6  ;;  %v2319_v32 = vrot.slane %v3687_v33, %v3735_v56 }
 0x103   : > { %v3691_v14 = vpop.xlane.xlu0 %2019  ;;  %v3697_v42 = vpop.xlane.xlu1 %2016 }
 0x104   : > { %v2353_v34 = vrot.slane %v3691_v14, %v3728_v51  ;;  %v2349_v19 = vrot.slane %v3697_v42, %v3725_v50 }
 0x106   : > { %v2354_v4 = vsel %vm1432_vm2, %v2353_v34, %v2349_v19 }
 0x107   : > { %v3695_v41 = vpop.xlane.xlu0 %1938  ;;  %v3701_v45 = vpop.xlane.xlu1 %1914 }
 0x108   : > { %v2222_v20 = vrot.slane %v3695_v41, %v3815_v38  ;;  %v2183_v16 = vrot.slane %v3701_v45, %v3815_v38  ;;  %v2286_v41 = vsel %vm1446_vm4, %v2285_v2, %v2281_v9 }
 0x10a   : > { %v2184_v26 = vsel %vm1467_vm7, %v2183_v16, %v2179_v17  ;;  %v2223_v2 = vsel %vm1467_vm7, %v2222_v20, %v2218_v23 }
 0x10b   : > { %v3699_v43 = vpop.xlane.xlu0 %1980 }
 0x10c   : > { %v2290_v33 = vrot.slane %v3699_v43, %v3762_v11 }
 0x10f   : > { %v3703_v46 = vpop.xlane.xlu0 %2022 }
 0x110   : > { %v3705_v47 = vpop.xlane.xlu1 %1959  ;;  %v2358_v60 = vrot.slane %v3703_v46, %v3735_v56  ;;  %v2320_v46 = vsel %vm1439_vm3, %v2319_v32, %v2315_v10 }
 0x111   : > { %v2256_v15 = vrot.slane %v3705_v47, %v3782_v40 }
 0x112   : > { %v2359_v10 = vsel %vm1439_vm3, %v2358_v60, %v2354_v4 }
 0x113   : > { %v3707_v29 = vpop.xlane.xlu0 %2043  ;;  %v2257_v19 = vsel %vm1460_vm6, %v2256_v15, %v2252_v3 }
 0x116   : > { %v3713_v44 = vpop.xlane.xlu1 %2001 }
 0x117   : > { %v3711_v12 = vpop.xlane.xlu0 %1917  ;;  %v2324_v27 = vrot.slane %v3713_v44, %v3750_v6 }
 0x118   : > { %v2188_v7 = vrot.slane %v3711_v12, %v3824_v30 }
 0x11a   : > { %v3720_v48 = vpop.xlane.xlu1 %2040  ;;  %v2189_v34 = vsel %vm1474_vm8, %v2188_v7, %v2184_v26 }
 0x11b   : > { %v3718_v0 = vpop.xlane.xlu0 %1962 }
 0x11e   : > { %v3732_v53 = vpop.xlane.xlu1 %1941 }
 0x11f   : > { %v3730_v52 = vpop.xlane.xlu0 %2004  ;;  %v2227_v9 = vrot.slane %v3732_v53, %v3824_v30 }
 0x120   : > { %v2329_v20 = vrot.slane %v3730_v52, %v3762_v11 }
 0x121   : > { %v2228_v23 = vsel %vm1474_vm8, %v2227_v9, %v2223_v2 }
 0x122   : > { %v3745_v1 = vpop.xlane.xlu1 %1983  ;;  %v2463_v15 = vsel %vm1749_vm9, %v2228_v23, %v2189_v34 }
 0x123   : > { %v3743_v63 = vpop.xlane.xlu0 %2046  ;;  %v2295_v17 = vrot.slane %v3745_v1, %v3782_v40  ;;  %v2325_v1 = vsel %vm1446_vm4, %v2324_v27, %v2320_v46 }
 0x124   : > { %v2330_v7 = vsel %vm1453_vm5, %v2329_v20, %v2325_v1 }
 0x126   : > { %v3766_v31 = vpop.xlane.xlu1 %2025 }
 0x127   : > { %v3764_v13 = vpop.xlane.xlu0 %2067  ;;  %v2363_v16 = vrot.slane %v3766_v31, %v3750_v6 }
 0x12a   : > { %v3790_v49 = vpop.xlane.xlu1 %2064 }
 0x12b   : > { %v3788_v22 = vpop.xlane.xlu0 %1986 }
 0x12e   : > { %v3819_v28 = vpop.xlane.xlu1 %1965 }
 0x12f   : > { %v3812_v8 = vpop.xlane.xlu0 %2028  ;;  %v2266_v52 = vrot.slane %v3819_v28, %v3824_v30  ;;  %v2364_v28 = vsel %vm1446_vm4, %v2363_v16, %v2359_v10 }
 0x130   : > { %v2751_v37 = vpop.f32.mrb[0].mxu0  ;;  %v2368_v26 = vrot.slane %v3812_v8, %v3762_v11 }
 0x131   : > { %v2767_v18 = vpop.f32.mrb[0].mxu1  ;;  %v1105_v55 = vmul.f32 %v2751_v37, %v2751_v37  ;;  %v393_v36 = vpop.f32.mrb[1].mxu0 }
 0x132   : > { %v1113_v21 = vmul.f32 %v2767_v18, %v2767_v18  ;;  %v2752_v14 = vpop.f32.mrb[2].mxu0  ;;  %v490_v57 = vpop.f32.mrb[1].mxu1  ;;  %v1103_v58 = vmul.f32 %v393_v36, %v393_v36  ;;  %v2291_v18 = vsel %vm1453_vm5, %v2290_v33, %v2286_v41 }
 0x133   : > { %v3835_v35 = vpop.xlane.xlu0 %2070  ;;  %v1106_v42 = vmul.f32 %v2752_v14, %v2752_v14  ;;  %v396_v59 = vpop.f32.mrb[3].mxu0  ;;  %v1173_v54 = vsel %vm346_vm1, %v1105_v55, 0.0  ;;  %v1111_v24 = vmul.f32 %v490_v57, %v490_v57  ;;  %v2261_v55 = vrot.slane %v3718_v0, %v3815_v38 }
 0x134   : > { %v1197_v25 = vsel %vm346_vm1, %v1113_v21, 0.0  ;;  %v2768_v39 = vpop.f32.mrb[2].mxu1  ;;  %1174 = vadd.xlane.f32.xlu1 %v1173_v54  ;;  %v3851_v61 = vpop.xlane.xlu1 %2007  ;;  %v1104_v37 = vmul.f32 %v396_v59, %v396_v59  ;;  %v1167_v12 = vsel %vm346_vm1, %v1103_v58, 0.0  ;;  %v2300_v0 = vrot.slane %v3788_v22, %v3815_v38 }
 0x135   : > { %1198 = vadd.xlane.f32.xlu0 %v1197_v25  ;;  %v493_v45 = vpop.f32.mrb[3].mxu1  ;;  %v1176_v47 = vsel %vm346_vm1, %v1106_v42, 0.0  ;;  %v1191_v36 = vsel %vm346_vm1, %v1111_v24, 0.0  ;;  %v1114_v57 = vmul.f32 %v2768_v39, %v2768_v39  ;;  %v2296_v54 = vsel %vm1460_vm6, %v2295_v17, %v2291_v18 }
 0x136   : > { %v1112_v58 = vmul.f32 %v493_v45, %v493_v45  ;;  %v1170_v42 = vsel %vm346_vm1, %v1104_v37, 0.0  ;;  %v2262_v41 = vsel %vm1467_vm7, %v2261_v55, %v2257_v19  ;;  %v2334_v22 = vrot.slane %v3851_v61, %v3782_v40 }
 0x137   : > { %v3858_v43 = vpop.xlane.xlu0 %1989  ;;  %v2301_v24 = vsel %vm1467_vm7, %v2300_v0, %v2296_v54  ;;  %v1200_v46 = vsel %vm346_vm1, %v1114_v57, 0.0  ;;  %v2267_v27 = vsel %vm1474_vm8, %v2266_v52, %v2262_v41 }
 0x138   : > { %1177 = vadd.xlane.f32.xlu1 %v1176_v47  ;;  %v3873_v44 = vpop.xlane.xlu1 %2049  ;;  %v2755_v53 = vpop.f32.mrb[4].mxu0  ;;  %v1194_v61 = vsel %vm346_vm1, %v1112_v58, 0.0  ;;  %v2305_v9 = vrot.slane %v3858_v43, %v3824_v30  ;;  %v2464_v34 = vsel %vm1751_vm10, %v2267_v27, %v2463_v15 }
 0x139   : > { %1168 = vadd.xlane.f32.xlu0 %v1167_v12  ;;  %v409_v32 = vpop.f32.mrb[5].mxu0  ;;  %v2771_v3 = vpop.f32.mrb[4].mxu1  ;;  %v1109_v39 = vmul.f32 %v2755_v53, %v2755_v53  ;;  %v2335_v12 = vsel %vm1460_vm6, %v2334_v22, %v2330_v7  ;;  %v2369_v53 = vsel %vm1453_vm5, %v2368_v26, %v2364_v28 }
 0x13a   : > { %v2756_v14 = vpop.f32.mrb[6].mxu0  ;;  %v506_v25 = vpop.f32.mrb[5].mxu1  ;;  %v1117_v45 = vmul.f32 %v2771_v3, %v2771_v3  ;;  %v1107_v43 = vmul.f32 %v409_v32, %v409_v32  ;;  %v2306_v19 = vsel %vm1474_vm8, %v2305_v9, %v2301_v24 }
 0x13b   : > { %v3879_v21 = vpop.xlane.xlu0 %2031  ;;  %v412_v59 = vpop.f32.mrb[7].mxu0  ;;  %v1115_v8 = vmul.f32 %v506_v25, %v506_v25  ;;  %v1185_v17 = vsel %vm346_vm1, %v1109_v39, 0.0  ;;  %v2465_v3 = vsel %vm1753_vm11, %v2306_v19, %v2464_v34  ;;  %v1110_v0 = vmul.f32 %v2756_v14, %v2756_v14 }
 0x13c   : > { %1171 = vadd.xlane.f32.xlu1 %v1170_v42  ;;  %v2011_v33 = vpop.xlane.xlu1 %2010  ;;  %v2772_v31 = vpop.f32.mrb[6].mxu1  ;;  %v1209_v18 = vsel %vm346_vm1, %v1117_v45, 0.0  ;;  %v2373_v10 = vrot.slane %v3879_v21, %v3782_v40  ;;  %v1179_v57 = vsel %vm346_vm1, %v1107_v43, 0.0  ;;  %v1108_v41 = vmul.f32 %v412_v59, %v412_v59 }
 0x13d   : > { %1192 = vadd.xlane.f32.xlu0 %v1191_v36  ;;  %v509_v4 = vpop.f32.mrb[7].mxu1  ;;  %v2339_v2 = vrot.slane %v2011_v33, %v3815_v38  ;;  %v1118_v23 = vmul.f32 %v2772_v31, %v2772_v31  ;;  %v1203_v21 = vsel %vm346_vm1, %v1115_v8, 0.0  ;;  %v1188_v14 = vsel %vm346_vm1, %v1110_v0, 0.0 }
 0x13e   : > { %v2374_v32 = vsel %vm1460_vm6, %v2373_v10, %v2369_v53  ;;  %v1116_v54 = vmul.f32 %v509_v4, %v509_v4  ;;  %v1182_v4 = vsel %vm346_vm1, %v1108_v41, 0.0 }
 0x13f   : > { %v3897_v60 = vpop.xlane.xlu0 %2073  ;;  %v2340_v55 = vsel %vm1467_vm7, %v2339_v2, %v2335_v12  ;;  %v1212_v52 = vsel %vm346_vm1, %v1118_v23, 0.0 }
 0x140   : > { %1195 = vadd.xlane.f32.xlu1 %v1194_v61  ;;  %v3911_v37 = vpop.xlane.xlu1 %2052  ;;  %v1206_v39 = vsel %vm346_vm1, %v1116_v54, 0.0  ;;  %v3123_v61 = vmov 0  }
 0x141   : > { %1201 = vadd.xlane.f32.xlu0 %v1200_v46 }
 0x142   : > { %2956 = vset.pattern.permute.xlu0 %v3123_v61 }
 0x143   : > { %v2035_v47 = vpop.xlane.xlu0 %2034 }
 0x144   : > { %1186 = vadd.xlane.f32.xlu1 %v1185_v17  ;;  %v2014_v36 = vpop.xlane.xlu1 %2013  ;;  %v2378_v1 = vrot.slane %v2035_v47, %v3815_v38 }
 0x145   : > { %1210 = vadd.xlane.f32.xlu0 %v1209_v18  ;;  %v2344_v16 = vrot.slane %v2014_v36, %v3824_v30 }
 0x146   : > { %v2379_v42 = vsel %vm1467_vm7, %v2378_v1, %v2374_v32 }
 0x147   : > { %v3923_v20 = vpop.xlane.xlu0 %2076  ;;  %v2345_v58 = vsel %vm1474_vm8, %v2344_v16, %v2340_v55 }
 0x148   : > { %1180 = vadd.xlane.f32.xlu1 %v1179_v57  ;;  %v2466_v33 = vsel %vm1755_vm12, %v2345_v58, %v2465_v3 }
 0x149   : > { %1204 = vadd.xlane.f32.xlu0 %v1203_v21 }
 0x14b   : > { %v2038_v25 = vpop.xlane.xlu0 %2037 }
 0x14c   : > { %v2383_v31 = vrot.slane %v2038_v25, %v3824_v30  ;;  %1189 = vadd.xlane.f32.xlu1 %v1188_v14 }
 0x14d   : > { %1213 = vadd.xlane.f32.xlu0 %v1212_v52 }
 0x14e   : > { %v2384_v22 = vsel %vm1474_vm8, %v2383_v31, %v2379_v42 }
 0x14f   : > { %v3939_v45 = vsel %vm1757_vm13, %v2384_v22, %v2466_v33 }
 0x150   : > { %1183 = vadd.xlane.f32.xlu1 %v1182_v4 }
 0x151   : > { %v2799_v7 = vpop.f32.mrb[8].mxu1  ;;  %1207 = vadd.xlane.f32.xlu0 %v1206_v39 }
 0x152   : > { %v2783_v15 = vpop.f32.mrb[8].mxu0  ;;  %v1129_v28 = vmul.f32 %v2799_v7, %v2799_v7  ;;  %v684_v46 = vpop.f32.mrb[9].mxu1 }
 0x153   : > { %v1121_v24 = vmul.f32 %v2783_v15, %v2783_v15  ;;  %v587_v59 = vpop.f32.mrb[9].mxu0  ;;  %v1127_v2 = vmul.f32 %v684_v46, %v684_v46  ;;  %v2800_v8 = vpop.f32.mrb[10].mxu1 }
 0x154   : > { %v2784_v26 = vpop.f32.mrb[10].mxu0  ;;  %v1119_v27 = vmul.f32 %v587_v59, %v587_v59  ;;  %v1245_v12 = vsel %vm346_vm1, %v1129_v28, 0.0  ;;  %v1130_v18 = vmul.f32 %v2800_v8, %v2800_v8  ;;  %v687_v10 = vpop.f32.mrb[11].mxu1 }
 0x155   : > { %v590_v9 = vpop.f32.mrb[11].mxu0  ;;  %v1221_v47 = vsel %vm346_vm1, %v1121_v24, 0.0  ;;  %1246 = vadd.xlane.f32.xlu0 %v1245_v12  ;;  %v1239_v17 = vsel %vm346_vm1, %v1127_v2, 0.0  ;;  %v1122_v53 = vmul.f32 %v2784_v26, %v2784_v26  ;;  %v1128_v32 = vmul.f32 %v687_v10, %v687_v10 }
 0x156   : > { %1222 = vadd.xlane.f32.xlu1 %v1221_v47  ;;  %v1215_v43 = vsel %vm346_vm1, %v1119_v27, 0.0  ;;  %v1248_v55 = vsel %vm346_vm1, %v1130_v18, 0.0  ;;  %v1120_v16 = vmul.f32 %v590_v9, %v590_v9 }
 0x157   : > { %v1224_v3 = vsel %vm346_vm1, %v1122_v53, 0.0  ;;  %v1242_v25 = vsel %vm346_vm1, %v1128_v32, 0.0 }
 0x158   : > { %v1218_v54 = vsel %vm346_vm1, %v1120_v16, 0.0 }
 0x159   : > { %1240 = vadd.xlane.f32.xlu0 %v1239_v17  ;;  %v2803_v19 = vpop.f32.mrb[12].mxu1 }
 0x15a   : > { %1216 = vadd.xlane.f32.xlu1 %v1215_v43  ;;  %v2787_v34 = vpop.f32.mrb[12].mxu0  ;;  %v700_v1 = vpop.f32.mrb[13].mxu1  ;;  %v1133_v42 = vmul.f32 %v2803_v19, %v2803_v19 }
 0x15b   : > { %v603_v36 = vpop.f32.mrb[13].mxu0  ;;  %v2804_v21 = vpop.f32.mrb[14].mxu1  ;;  %v1125_v58 = vmul.f32 %v2787_v34, %v2787_v34  ;;  %v1131_v52 = vmul.f32 %v700_v1, %v700_v1 }
 0x15c   : > { %v2788_v23 = vpop.f32.mrb[14].mxu0  ;;  %v703_v57 = vpop.f32.mrb[15].mxu1  ;;  %v1257_v33 = vsel %vm346_vm1, %v1133_v42, 0.0  ;;  %v1123_v41 = vmul.f32 %v603_v36, %v603_v36  ;;  %v1134_v15 = vmul.f32 %v2804_v21, %v2804_v21 }
 0x15d   : > { %v606_v0 = vpop.f32.mrb[15].mxu0  ;;  %1249 = vadd.xlane.f32.xlu0 %v1248_v55  ;;  %v1233_v31 = vsel %vm346_vm1, %v1125_v58, 0.0  ;;  %v1132_v14 = vmul.f32 %v703_v57, %v703_v57  ;;  %v1251_v22 = vsel %vm346_vm1, %v1131_v52, 0.0  ;;  %v1126_v39 = vmul.f32 %v2788_v23, %v2788_v23 }
 0x15e   : > { %1225 = vadd.xlane.f32.xlu1 %v1224_v3  ;;  %v1227_v4 = vsel %vm346_vm1, %v1123_v41, 0.0  ;;  %v1124_v24 = vmul.f32 %v606_v0, %v606_v0  ;;  %v1260_v59 = vsel %vm346_vm1, %v1134_v15, 0.0 }
 0x15f   : > { %v1254_v7 = vsel %vm346_vm1, %v1132_v14, 0.0  ;;  %v1236_v28 = vsel %vm346_vm1, %v1126_v39, 0.0 }
 0x160   : > { %v1230_v17 = vsel %vm346_vm1, %v1124_v24, 0.0 }
 0x161   : > { %1219 = vadd.xlane.f32.xlu0 %v1218_v54 }
 0x162   : > { %1243 = vadd.xlane.f32.xlu1 %v1242_v25 }
 0x165   : > { %1258 = vadd.xlane.f32.xlu0 %v1257_v33 }
 0x166   : > { %1234 = vadd.xlane.f32.xlu1 %v1233_v31 }
 0x169   : > { %1252 = vadd.xlane.f32.xlu0 %v1251_v22 }
 0x16a   : > { %1228 = vadd.xlane.f32.xlu1 %v1227_v4 }
 0x16d   : > { %1255 = vadd.xlane.f32.xlu0 %v1254_v7 }
 0x16e   : > { %1237 = vadd.xlane.f32.xlu1 %v1236_v28 }
 0x171   : > { %v2831_v26 = vpop.f32.mrb[16].mxu1 }
 0x172   : > { %1261 = vadd.xlane.f32.xlu1 %v1260_v59  ;;  %v2815_v46 = vpop.f32.mrb[16].mxu0  ;;  %v1145_v61 = vmul.f32 %v2831_v26, %v2831_v26  ;;  %v878_v2 = vpop.f32.mrb[17].mxu1 }
 0x173   : > { %v1137_v27 = vmul.f32 %v2815_v46, %v2815_v46  ;;  %v781_v9 = vpop.f32.mrb[17].mxu0  ;;  %v1143_v47 = vmul.f32 %v878_v2, %v878_v2  ;;  %v2832_v8 = vpop.f32.mrb[18].mxu1 }
 0x174   : > { %v2816_v12 = vpop.f32.mrb[18].mxu0  ;;  %v1293_v18 = vsel %vm346_vm1, %v1145_v61, 0.0  ;;  %v881_v53 = vpop.f32.mrb[19].mxu1  ;;  %v1146_v43 = vmul.f32 %v2832_v8, %v2832_v8  ;;  %v1135_v55 = vmul.f32 %v781_v9, %v781_v9 }
 0x175   : > { %v784_v10 = vpop.f32.mrb[19].mxu0  ;;  %1294 = vadd.xlane.f32.xlu0 %v1293_v18  ;;  %v1287_v34 = vsel %vm346_vm1, %v1143_v47, 0.0  ;;  %v1269_v19 = vsel %vm346_vm1, %v1137_v27, 0.0  ;;  %v1138_v0 = vmul.f32 %v2816_v12, %v2816_v12  ;;  %v1144_v52 = vmul.f32 %v881_v53, %v881_v53 }
 0x176   : > { %1231 = vadd.xlane.f32.xlu1 %v1230_v17  ;;  %v1296_v23 = vsel %vm346_vm1, %v1146_v43, 0.0  ;;  %v1136_v57 = vmul.f32 %v784_v10, %v784_v10  ;;  %v1263_v58 = vsel %vm346_vm1, %v1135_v55, 0.0 }
 0x177   : > { %v1272_v33 = vsel %vm346_vm1, %v1138_v0, 0.0  ;;  %v1290_v39 = vsel %vm346_vm1, %v1144_v52, 0.0 }
 0x178   : > { %v1266_v31 = vsel %vm346_vm1, %v1136_v57, 0.0 }
 0x179   : > { %1288 = vadd.xlane.f32.xlu0 %v1287_v34  ;;  %v2835_v1 = vpop.f32.mrb[20].mxu1 }
 0x17a   : > { %1270 = vadd.xlane.f32.xlu1 %v1269_v19  ;;  %v2819_v36 = vpop.f32.mrb[20].mxu0  ;;  %v894_v16 = vpop.f32.mrb[21].mxu1  ;;  %v1149_v14 = vmul.f32 %v2835_v1, %v2835_v1 }
 0x17b   : > { %v797_v21 = vpop.f32.mrb[21].mxu0  ;;  %v2836_v3 = vpop.f32.mrb[22].mxu1  ;;  %v1141_v54 = vmul.f32 %v2819_v36, %v2819_v36  ;;  %v1147_v4 = vmul.f32 %v894_v16, %v894_v16 }
 0x17c   : > { %v2820_v32 = vpop.f32.mrb[22].mxu0  ;;  %v897_v25 = vpop.f32.mrb[23].mxu1  ;;  %v1139_v41 = vmul.f32 %v797_v21, %v797_v21  ;;  %v1305_v7 = vsel %vm346_vm1, %v1149_v14, 0.0  ;;  %v1150_v59 = vmul.f32 %v2836_v3, %v2836_v3 }
 0x17d   : > { %v800_v42 = vpop.f32.mrb[23].mxu0  ;;  %1297 = vadd.xlane.f32.xlu0 %v1296_v23  ;;  %v1281_v22 = vsel %vm346_vm1, %v1141_v54, 0.0  ;;  %v1142_v28 = vmul.f32 %v2820_v32, %v2820_v32  ;;  %v1299_v24 = vsel %vm346_vm1, %v1147_v4, 0.0  ;;  %v1148_v10 = vmul.f32 %v897_v25, %v897_v25 }
 0x17e   : > { %1264 = vadd.xlane.f32.xlu1 %v1263_v58  ;;  %v1275_v15 = vsel %vm346_vm1, %v1139_v41, 0.0  ;;  %v1140_v46 = vmul.f32 %v800_v42, %v800_v42  ;;  %v1308_v61 = vsel %vm346_vm1, %v1150_v59, 0.0  ;;  %v2388_v4 = vrot.slane %v3720_v48, %v3725_v50 }
 0x17f   : > { %v1284_v26 = vsel %vm346_vm1, %v1142_v28, 0.0  ;;  %v1302_v23 = vsel %vm346_vm1, %v1148_v10, 0.0  ;;  %v2397_v28 = vrot.slane %v3743_v63, %v3735_v56  ;;  %v2427_v59 = vrot.slane %v3790_v49, %v3725_v50 }
 0x180   : > { %v1278_v43 = vsel %vm346_vm1, %v1140_v46, 0.0  ;;  %v2436_v63 = vrot.slane %v3835_v35, %v3735_v56 }
 0x181   : > { %1267 = vadd.xlane.f32.xlu0 %v1266_v31 }
 0x182   : > { %1273 = vadd.xlane.f32.xlu1 %v1272_v33 }
 0x185   : > { %1282 = vadd.xlane.f32.xlu0 %v1281_v22 }
 0x186   : > { %1291 = vadd.xlane.f32.xlu1 %v1290_v39  ;;  %v2392_v39 = vrot.slane %v3707_v29, %v3728_v51 }
 0x188   : > { %v2393_v48 = vsel %vm1432_vm2, %v2392_v39, %v2388_v4 }
 0x189   : > { %1306 = vadd.xlane.f32.xlu0 %v1305_v7  ;;  %v2398_v49 = vsel %vm1439_vm3, %v2397_v28, %v2393_v48 }
 0x18a   : > { %1276 = vadd.xlane.f32.xlu1 %v1275_v15 }
 0x18d   : > { %1300 = vadd.xlane.f32.xlu0 %v1299_v24  ;;  %v2431_v24 = vrot.slane %v3764_v13, %v3728_v51  ;;  %v2402_v13 = vrot.slane %v3873_v44, %v3750_v6 }
 0x18e   : > { %1285 = vadd.xlane.f32.xlu1 %v1284_v26  ;;  %v2056_v26 = vpop.xlane.xlu1 %2055 }
 0x18f   : > { %v2403_v10 = vsel %vm1446_vm4, %v2402_v13, %v2398_v49 }
 0x191   : > { %v2863_v27 = vpop.f32.mrb[24].mxu1 }
 0x192   : > { %1309 = vadd.xlane.f32.xlu1 %v1308_v61  ;;  %v2847_v9 = vpop.f32.mrb[24].mxu0  ;;  %v1161_v2 = vmul.f32 %v2863_v27, %v2863_v27  ;;  %v1072_v12 = vpop.f32.mrb[25].mxu1 }
 0x193   : > { %v975_v47 = vpop.f32.mrb[25].mxu0  ;;  %v1159_v8 = vmul.f32 %v1072_v12, %v1072_v12  ;;  %v2864_v17 = vpop.f32.mrb[26].mxu1  ;;  %v1153_v55 = vmul.f32 %v2847_v9, %v2847_v9 }
 0x194   : > { %v2848_v18 = vpop.f32.mrb[26].mxu0  ;;  %v1341_v53 = vsel %vm346_vm1, %v1161_v2, 0.0  ;;  %v1075_v19 = vpop.f32.mrb[27].mxu1  ;;  %v1151_v54 = vmul.f32 %v975_v47, %v975_v47  ;;  %v1162_v46 = vmul.f32 %v2864_v17, %v2864_v17  ;;  %v2432_v2 = vsel %vm1432_vm2, %v2431_v24, %v2427_v59  ;;  %v222_v24 = vld [vmem:[%s3248_s7] sm:$0xff] }
 0x195   : > { %v978_v34 = vpop.f32.mrb[27].mxu0  ;;  %1342 = vadd.xlane.f32.xlu0 %v1341_v53  ;;  %v1335_v36 = vsel %vm346_vm1, %v1159_v8, 0.0  ;;  %v1317_v32 = vsel %vm346_vm1, %v1153_v55, 0.0  ;;  %v1154_v14 = vmul.f32 %v2848_v18, %v2848_v18  ;;  %v2080_v9 = vpop.xlane.xlu0 %2079  ;;  %v1160_v12 = vmul.f32 %v1075_v19, %v1075_v19 }
 0x196   : > { %1279 = vadd.xlane.f32.xlu1 %v1278_v43  ;;  %v1152_v1 = vmul.f32 %v978_v34, %v978_v34  ;;  %v1311_v22 = vsel %vm346_vm1, %v1151_v54, 0.0  ;;  %v1344_v47 = vsel %vm346_vm1, %v1162_v46, 0.0  ;;  %v2441_v8 = vrot.slane %v3897_v60, %v3750_v6  ;;  %v2059_v35 = vpop.xlane.xlu1 %2058 }
 0x197   : > { %v1320_v29 = vsel %vm346_vm1, %v1154_v14, 0.0  ;;  %v2407_v18 = vrot.slane %v3911_v37, %v3762_v11  ;;  %v2437_v44 = vsel %vm1439_vm3, %v2436_v63, %v2432_v2  ;;  %v1338_v43 = vsel %vm346_vm1, %v1160_v12, 0.0 }
 0x198   : > { %v1314_v3 = vsel %vm346_vm1, %v1152_v1, 0.0  ;;  %v2446_v34 = vrot.slane %v3923_v20, %v3762_v11  ;;  %v2412_v19 = vrot.slane %v2056_v26, %v3782_v40  ;;  %v2442_v60 = vsel %vm1446_vm4, %v2441_v8, %v2437_v44 }
 0x199   : > { %1336 = vadd.xlane.f32.xlu0 %v1335_v36  ;;  %v2867_v16 = vpop.f32.mrb[28].mxu1  ;;  %v2083_v55 = vpop.xlane.xlu0 %2082  ;;  %v2408_v37 = vsel %vm1453_vm5, %v2407_v18, %v2403_v10  ;;  %v2451_v36 = vrot.slane %v2080_v9, %v3782_v40  ;;  %v2417_v1 = vrot.slane %v2059_v35, %v3815_v38 }
 0x19a   : > { %1303 = vadd.xlane.f32.xlu1 %v1302_v23  ;;  %v2851_v21 = vpop.f32.mrb[28].mxu0  ;;  %v1088_v58 = vpop.f32.mrb[29].mxu1  ;;  %v1165_v31 = vmul.f32 %v2867_v16, %v2867_v16  ;;  %v2413_v20 = vsel %vm1460_vm6, %v2412_v19, %v2408_v37 }
 0x19b   : > { %v1157_v0 = vmul.f32 %v2851_v21, %v2851_v21  ;;  %v991_v57 = vpop.f32.mrb[29].mxu0  ;;  %v3978_v25 = vpop.f32.mrb[30].mxu1  ;;  %v1163_v27 = vmul.f32 %v1088_v58, %v1088_v58 }
 0x19c   : > { %v2852_v42 = vpop.f32.mrb[30].mxu0  ;;  %v1091_v33 = vpop.f32.mrb[31].mxu1  ;;  %v1353_v7 = vsel %vm346_vm1, %v1165_v31, 0.0  ;;  %v1155_v15 = vmul.f32 %v991_v57, %v991_v57 }
 0x19d   : > { %v994_v52 = vpop.f32.mrb[31].mxu0  ;;  %1315 = vadd.xlane.f32.xlu0 %v1314_v3  ;;  %v1329_v41 = vsel %vm346_vm1, %v1157_v0, 0.0  ;;  %v1347_v17 = vsel %vm346_vm1, %v1163_v27, 0.0  ;;  %v1158_v53 = vmul.f32 %v2852_v42, %v2852_v42  ;;  %v2062_v23 = vpop.xlane.xlu1 %2061  ;;  %v2456_v3 = vrot.slane %v2083_v55, %v3815_v38 }
 0x19e   : > { %1318 = vadd.xlane.f32.xlu1 %v1317_v32  ;;  %v1323_v61 = vsel %vm346_vm1, %v1155_v15, 0.0  ;;  %v1156_v21 = vmul.f32 %v994_v52, %v994_v52  ;;  %v2447_v32 = vsel %vm1453_vm5, %v2446_v34, %v2442_v60  ;;  %v2422_v0 = vrot.slane %v2062_v23, %v3824_v30  ;;  %v2086_v57 = vpop.xlane.xlu0 %2085 }
 0x19f   : > { %v1332_v16 = vsel %vm346_vm1, %v1158_v53, 0.0  ;;  %v2452_v58 = vsel %vm1460_vm6, %v2451_v36, %v2447_v32  ;;  %v2418_v42 = vsel %vm1467_vm7, %v2417_v1, %v2413_v20  ;;  %v1164_v54 = vmul.f32 %v1091_v33, %v1091_v33 }
 0x1a0   : > { %v1326_v31 = vsel %vm346_vm1, %v1156_v21, 0.0  ;;  %v2461_v52 = vrot.slane %v2086_v57, %v3824_v30  ;;  %v2423_v14 = vsel %vm1474_vm8, %v2422_v0, %v2418_v42 }
 0x1a1   : > { %1330 = vadd.xlane.f32.xlu0 %v1329_v41  ;;  %v2457_v41 = vsel %vm1467_vm7, %v2456_v3, %v2452_v58  ;;  %v1350_v39 = vsel %vm346_vm1, %v1164_v54, 0.0  ;;  %v2468_v4 = vsel %vm1759_vm14, %v2423_v14, %v3939_v45 }
 0x1a2   : > { %1312 = vadd.xlane.f32.xlu1 %v1311_v22  ;;  %v1166_v22 = vmul.f32 %v3978_v25, %v3978_v25  ;;  %v2462_v33 = vsel %vm1474_vm8, %v2461_v52, %v2457_v41 }
 0x1a3   : > { %v2469_v15 = vsel %vm1761_vm15, %v2462_v33, %v2468_v4 }
 0x1a4   : > { %v2471_v28 = vsel %vm346_vm1, %v2469_v15, 0.0 }
 0x1a5   : > { %1354 = vadd.xlane.f32.xlu0 %v1353_v7  ;;  %v1356_v7 = vsel %vm346_vm1, %v1166_v22, 0.0 }
 0x1a6   : > { %1321 = vadd.xlane.f32.xlu1 %v1320_v29 }
 0x1a9   : > { %1324 = vadd.xlane.f32.xlu0 %v1323_v61 }
 0x1aa   : > { %1345 = vadd.xlane.f32.xlu1 %v1344_v47 }
 0x1ad   : > { %1348 = vadd.xlane.f32.xlu0 %v1347_v17 }
 0x1ae   : > { %1339 = vadd.xlane.f32.xlu1 %v1338_v43 }
 0x1b2   : > { %1333 = vadd.xlane.f32.xlu1 %v1332_v16 }
 0x1b6   : > { %1327 = vadd.xlane.f32.xlu1 %v1326_v31 }
 0x1ba   : > { %1351 = vadd.xlane.f32.xlu1 %v1350_v39 }
 0x1be   : > { %1357 = vadd.xlane.f32.xlu1 %v1356_v7 }
 0x1c1   : > { %v1175_v25 = vpop.xlane.xlu1 %1174 }
 0x1c2   : > { %2472 = vadd.xlane.f32.xlu1 %v2471_v28  ;;  %v1199_v59 = vpop.xlane.xlu0 %1198  ;;  %v1438_v27 = vrot.slane %v1175_v25, %v3735_v56 }
 0x1c3   : > { %234 = vperm.xlu0 %2956, %v222_v24   ;;  %v1488_v18 = vrot.slane %v1199_v59, %v3735_v56 }
 0x1c5   : > { %v1178_v46 = vpop.xlane.xlu1 %1177 }
 0x1c6   : > { %v1169_v26 = vpop.xlane.xlu0 %1168  ;;  %v1445_v63 = vrot.slane %v1178_v46, %v3750_v6 }
 0x1c7   : > { %v1426_v61 = vrot.slane %v1169_v26, %v3725_v50 }
 0x1c9   : > { %v1172_v48 = vpop.xlane.xlu1 %1171 }
 0x1ca   : > { %v1193_v29 = vpop.xlane.xlu0 %1192  ;;  %v1431_v45 = vrot.slane %v1172_v48, %v3728_v51 }
 0x1cb   : > { %v1479_v12 = vrot.slane %v1193_v29, %v3725_v50 }
 0x1cc   : > { %v1433_v13 = vsel %vm1432_vm2, %v1431_v45, %v1426_v61 }
 0x1cd   : > { %v1440_v9 = vsel %vm1439_vm3, %v1438_v27, %v1433_v13  ;;  %v1196_v2 = vpop.xlane.xlu1 %1195 }
 0x1ce   : > { %v1202_v49 = vpop.xlane.xlu0 %1201  ;;  %v1483_v47 = vrot.slane %v1196_v2, %v3728_v51  ;;  %v1447_v8 = vsel %vm1446_vm4, %v1445_v63, %v1440_v9 }
 0x1cf   : > { %v1493_v35 = vrot.slane %v1202_v49, %v3750_v6 }
 0x1d0   : > { %v1484_v17 = vsel %vm1432_vm2, %v1483_v47, %v1479_v12 }
 0x1d1   : > { %v1489_v44 = vsel %vm1439_vm3, %v1488_v18, %v1484_v17  ;;  %v1187_v53 = vpop.xlane.xlu1 %1186 }
 0x1d2   : > { %v1211_v10 = vpop.xlane.xlu0 %1210  ;;  %v1494_v43 = vsel %vm1446_vm4, %v1493_v35, %v1489_v44  ;;  %v1466_v57 = vrot.slane %v1187_v53, %v3815_v38 }
 0x1d3   : > { %v1508_v21 = vrot.slane %v1211_v10, %v3815_v38 }
 0x1d5   : > { %v1181_v19 = vpop.xlane.xlu1 %1180 }
 0x1d6   : > { %v1205_v34 = vpop.xlane.xlu0 %1204  ;;  %v1452_v60 = vrot.slane %v1181_v19, %v3762_v11 }
 0x1d7   : > { %v1498_v55 = vrot.slane %v1205_v34, %v3762_v11 }
 0x1d8   : > { %v1454_v36 = vsel %vm1453_vm5, %v1452_v60, %v1447_v8 }
 0x1d9   : > { %v1499_v37 = vsel %vm1453_vm5, %v1498_v55, %v1494_v43  ;;  %v1190_v23 = vpop.xlane.xlu1 %1189 }
 0x1da   : > { %v1214_v1 = vpop.xlane.xlu0 %1213  ;;  %v1473_v58 = vrot.slane %v1190_v23, %v3824_v30 }
 0x1db   : > { %v1513_v20 = vrot.slane %v1214_v1, %v3824_v30 }
 0x1dd   : > { %v1184_v32 = vpop.xlane.xlu1 %1183 }
 0x1de   : > { %v1208_v16 = vpop.xlane.xlu0 %1207  ;;  %v1459_v0 = vrot.slane %v1184_v32, %v3782_v40 }
 0x1df   : > { %v1503_v3 = vrot.slane %v1208_v16, %v3782_v40 }
 0x1e0   : > { %v1461_v54 = vsel %vm1460_vm6, %v1459_v0, %v1454_v36 }
 0x1e1   : > { %v1504_v42 = vsel %vm1460_vm6, %v1503_v3, %v1499_v37  ;;  %v1468_v52 = vsel %vm1467_vm7, %v1466_v57, %v1461_v54 }
 0x1e2   : > { %v1509_v31 = vsel %vm1467_vm7, %v1508_v21, %v1504_v42  ;;  %v1247_v41 = vpop.xlane.xlu0 %1246  ;;  %v1475_v39 = vsel %vm1474_vm8, %v1473_v58, %v1468_v52 }
 0x1e3   : > { %v1223_v14 = vpop.xlane.xlu1 %1222  ;;  %v1514_v22 = vsel %vm1474_vm8, %v1513_v20, %v1509_v31  ;;  %v1566_v48 = vrot.slane %v1247_v41, %v3735_v56 }
 0x1e4   : > { %v1750_v33 = vsel %vm1749_vm9, %v1514_v22, %v1475_v39  ;;  %v1527_v61 = vrot.slane %v1223_v14, %v3735_v56 }
 0x1e6   : > { %v1241_v4 = vpop.xlane.xlu0 %1240 }
 0x1e7   : > { %v1217_v7 = vpop.xlane.xlu1 %1216  ;;  %v1557_v25 = vrot.slane %v1241_v4, %v3725_v50 }
 0x1e8   : > { %v1518_v26 = vrot.slane %v1217_v7, %v3725_v50 }
 0x1ea   : > { %v1250_v15 = vpop.xlane.xlu0 %1249 }
 0x1eb   : > { %v1226_v28 = vpop.xlane.xlu1 %1225  ;;  %v1571_v45 = vrot.slane %v1250_v15, %v3750_v6 }
 0x1ec   : > { %v1532_v27 = vrot.slane %v1226_v28, %v3750_v6 }
 0x1ee   : > { %v1220_v59 = vpop.xlane.xlu0 %1219 }
 0x1ef   : > { %v1244_v24 = vpop.xlane.xlu1 %1243  ;;  %v1522_v29 = vrot.slane %v1220_v59, %v3728_v51 }
 0x1f0   : > { %v1561_v46 = vrot.slane %v1244_v24, %v3728_v51 }
 0x1f1   : > { %v1523_v13 = vsel %vm1432_vm2, %v1522_v29, %v1518_v26 }
 0x1f2   : > { %v1562_v63 = vsel %vm1432_vm2, %v1561_v46, %v1557_v25  ;;  %v1528_v49 = vsel %vm1439_vm3, %v1527_v61, %v1523_v13  ;;  %v1259_v2 = vpop.xlane.xlu0 %1258 }
 0x1f3   : > { %v1567_v9 = vsel %vm1439_vm3, %v1566_v48, %v1562_v63  ;;  %v1235_v12 = vpop.xlane.xlu1 %1234  ;;  %v1533_v8 = vsel %vm1446_vm4, %v1532_v27, %v1528_v49  ;;  %v1586_v19 = vrot.slane %v1259_v2, %v3815_v38 }
 0x1f4   : > { %v1572_v47 = vsel %vm1446_vm4, %v1571_v45, %v1567_v9  ;;  %v1547_v20 = vrot.slane %v1235_v12, %v3815_v38 }
 0x1f6   : > { %v1253_v18 = vpop.xlane.xlu0 %1252 }
 0x1f7   : > { %v1229_v35 = vpop.xlane.xlu1 %1228  ;;  %v1576_v44 = vrot.slane %v1253_v18, %v3762_v11 }
 0x1f8   : > { %v1537_v17 = vrot.slane %v1229_v35, %v3762_v11 }
 0x1f9   : > { %v1577_v55 = vsel %vm1453_vm5, %v1576_v44, %v1572_v47 }
 0x1fa   : > { %v1538_v10 = vsel %vm1453_vm5, %v1537_v17, %v1533_v8  ;;  %v1256_v53 = vpop.xlane.xlu0 %1255 }
 0x1fb   : > { %v1238_v43 = vpop.xlane.xlu1 %1237  ;;  %v1581_v34 = vrot.slane %v1256_v53, %v3782_v40 }
 0x1fc   : > { %v1552_v3 = vrot.slane %v1238_v43, %v3824_v30 }
 0x1fd   : > { %v1582_v60 = vsel %vm1460_vm6, %v1581_v34, %v1577_v55 }
 0x1fe   : > { %v1587_v1 = vsel %vm1467_vm7, %v1586_v19, %v1582_v60 }
 0x1ff   : > { %v1262_v37 = vpop.xlane.xlu1 %1261 }
 0x200   : > { %v1591_v36 = vrot.slane %v1262_v37, %v3824_v30 }
 0x202   : > { %v1592_v23 = vsel %vm1474_vm8, %v1591_v36, %v1587_v1  ;;  %v1295_v21 = vpop.xlane.xlu0 %1294 }
 0x203   : > { %v1232_v16 = vpop.xlane.xlu1 %1231  ;;  %v1644_v53 = vrot.slane %v1295_v21, %v3735_v56 }
 0x204   : > { %v1542_v32 = vrot.slane %v1232_v16, %v3782_v40 }
 0x206   : > { %v1543_v0 = vsel %vm1460_vm6, %v1542_v32, %v1538_v10  ;;  %v1289_v58 = vpop.xlane.xlu0 %1288 }
 0x207   : > { %v1548_v57 = vsel %vm1467_vm7, %v1547_v20, %v1543_v0  ;;  %v1271_v42 = vpop.xlane.xlu1 %1270  ;;  %v1635_v47 = vrot.slane %v1289_v58, %v3725_v50 }
 0x208   : > { %v1553_v54 = vsel %vm1474_vm8, %v1552_v3, %v1548_v57  ;;  %v1605_v35 = vrot.slane %v1271_v42, %v3735_v56 }
 0x209   : > { %v1752_v31 = vsel %vm1751_vm10, %v1553_v54, %v1750_v33 }
 0x20a   : > { %v4102_v52 = vsel %vm1753_vm11, %v1592_v23, %v1752_v31  ;;  %v1298_v41 = vpop.xlane.xlu0 %1297 }
 0x20b   : > { %v1265_v14 = vpop.xlane.xlu1 %1264  ;;  %v1649_v43 = vrot.slane %v1298_v41, %v3750_v6 }
 0x20c   : > { %v1596_v12 = vrot.slane %v1265_v14, %v3725_v50 }
 0x20e   : > { %v1268_v39 = vpop.xlane.xlu0 %1267 }
 0x20f   : > { %v1274_v22 = vpop.xlane.xlu1 %1273  ;;  %v1600_v13 = vrot.slane %v1268_v39, %v3728_v51 }
 0x210   : > { %v1610_v36 = vrot.slane %v1274_v22, %v3750_v6 }
 0x211   : > { %v1601_v8 = vsel %vm1432_vm2, %v1600_v13, %v1596_v12 }
 0x212   : > { %v4104_v7 = vpop.xlane.xlu0 %1282  ;;  %v1606_v19 = vsel %vm1439_vm3, %v1605_v35, %v1601_v8 }
 0x213   : > { %v1292_v4 = vpop.xlane.xlu1 %1291  ;;  %v1625_v54 = vrot.slane %v4104_v7, %v3815_v38 }
 0x214   : > { %v1639_v2 = vrot.slane %v1292_v4, %v3728_v51 }
 0x216   : > { %v4106_v28 = vpop.xlane.xlu0 %1306  ;;  %v1640_v17 = vsel %vm1432_vm2, %v1639_v2, %v1635_v47 }
 0x217   : > { %v1277_v15 = vpop.xlane.xlu1 %1276  ;;  %v1645_v1 = vsel %vm1439_vm3, %v1644_v53, %v1640_v17 }
 0x218   : > { %v1615_v55 = vrot.slane %v1277_v15, %v3762_v11  ;;  %v1650_v41 = vsel %vm1446_vm4, %v1649_v43, %v1645_v1 }
 0x21a   : > { %v1301_v59 = vpop.xlane.xlu0 %1300 }
 0x21b   : > { %v4108_v24 = vpop.xlane.xlu1 %1285  ;;  %v1654_v23 = vrot.slane %v1301_v59, %v3762_v11 }
 0x21d   : > { %v1655_v14 = vsel %vm1453_vm5, %v1654_v23, %v1650_v41 }
 0x21f   : > { %v4110_v25 = vpop.xlane.xlu1 %1309 }
 0x220   : > { %v1669_v2 = vrot.slane %v4110_v25, %v3824_v30 }
 0x222   : > { %v1343_v26 = vpop.xlane.xlu0 %1342 }
 0x223   : > { %v1280_v33 = vpop.xlane.xlu1 %1279 }
 0x224   : > { %v1620_v16 = vrot.slane %v1280_v33, %v3782_v40  ;;  %v1664_v33 = vrot.slane %v4106_v28, %v3815_v38 }
 0x226   : > { %v1337_v46 = vpop.xlane.xlu0 %1336 }
 0x227   : > { %v1304_v29 = vpop.xlane.xlu1 %1303  ;;  %v1713_v60 = vrot.slane %v1337_v46, %v3725_v50 }
 0x228   : > { %v1659_v32 = vrot.slane %v1304_v29, %v3782_v40 }
 0x22a   : > { %v1316_v61 = vpop.xlane.xlu0 %1315 }
 0x22b   : > { %v1319_v48 = vpop.xlane.xlu1 %1318  ;;  %v1678_v37 = vrot.slane %v1316_v61, %v3728_v51 }
 0x22c   : > { %v1683_v57 = vrot.slane %v1319_v48, %v3735_v56 }
 0x22e   : > { %v1331_v27 = vpop.xlane.xlu0 %1330 }
 0x22f   : > { %v1313_v45 = vpop.xlane.xlu1 %1312 }
 0x230   : > { %v1674_v44 = vrot.slane %v1313_v45, %v3725_v50  ;;  %v1611_v50 = vsel %vm1446_vm4, %v1610_v36, %v1606_v19  ;;  %v1703_v45 = vrot.slane %v1331_v27, %v3815_v38 }
 0x231   : > { %v1616_v31 = vsel %vm1453_vm5, %v1615_v55, %v1611_v50 }
 0x232   : > { %v4113_v9 = vpop.xlane.xlu0 %1354  ;;  %v1679_v20 = vsel %vm1432_vm2, %v1678_v37, %v1674_v44  ;;  %v1621_v22 = vsel %vm1460_vm6, %v1620_v16, %v1616_v31  ;;  %v221_v44 = vld [vmem:[%s3243_s4] sm:$0xff] }
 0x233   : > { %v1322_v63 = vpop.xlane.xlu1 %1321  ;;  %v1684_v39 = vsel %vm1439_vm3, %v1683_v57, %v1679_v20  ;;  %v1626_v61 = vsel %vm1467_vm7, %v1625_v54, %v1621_v22  ;;  %v1742_v35 = vrot.slane %v4113_v9, %v3815_v38 }
 0x234   : > { %v1688_v3 = vrot.slane %v1322_v63, %v3750_v6 }
 0x236   : > { %v1325_v34 = vpop.xlane.xlu0 %1324  ;;  %v1689_v59 = vsel %vm1446_vm4, %v1688_v3, %v1684_v39 }
 0x237   : > { %v1346_v49 = vpop.xlane.xlu1 %1345  ;;  %v1693_v58 = vrot.slane %v1325_v34, %v3762_v11 }
 0x239   : > { %v1694_v46 = vsel %vm1453_vm5, %v1693_v58, %v1689_v59 }
 0x23a   : > { %v1349_v42 = vpop.xlane.xlu0 %1348 }
 0x23b   : > { %v1340_v18 = vpop.xlane.xlu1 %1339  ;;  %v1732_v29 = vrot.slane %v1349_v42, %v3762_v11 }
 0x23c   : > { %v1717_v10 = vrot.slane %v1340_v18, %v3728_v51  ;;  %v1722_v51 = vrot.slane %v1343_v26, %v3735_v56  ;;  %v1660_v56 = vsel %vm1460_vm6, %v1659_v32, %v1655_v14  ;;  %v1727_v26 = vrot.slane %v1346_v49, %v3750_v6 }
 0x23d   : > { %v1630_v6 = vrot.slane %v4108_v24, %v3824_v30  ;;  %v1665_v49 = vsel %vm1467_vm7, %v1664_v33, %v1660_v56 }
 0x23e   : > { %v1718_v0 = vsel %vm1432_vm2, %v1717_v10, %v1713_v60  ;;  %v1670_v18 = vsel %vm1474_vm8, %v1669_v2, %v1665_v49  ;;  %vm240_vm2 = vcmask 130048  }
 0x23f   : > { %v1334_v21 = vpop.xlane.xlu1 %1333  ;;  %v1723_v4 = vsel %vm1439_vm3, %v1722_v51, %v1718_v0  ;;  %v1631_v27 = vsel %vm1474_vm8, %v1630_v6, %v1626_v61  ;;  %v2485_v6 = vld [vmem:[#allocation3] sm:$0x1] }
 0x240   : > { %v1728_v63 = vsel %vm1446_vm4, %v1727_v26, %v1723_v4  ;;  %v1708_v8 = vrot.slane %v1334_v21, %v3824_v30  ;;  %v1756_v53 = vsel %vm1755_vm12, %v1631_v27, %v4102_v52  ;;  %vm247_vm4 = vcmask 7168  }
 0x241   : > { %v1733_v47 = vsel %vm1453_vm5, %v1732_v29, %v1728_v63  ;;  %v1758_v34 = vsel %vm1757_vm13, %v1670_v18, %v1756_v53 }
 0x242   : > { %v235_v48 = vpop.permute.xlu0 %234 }
 0x243   : > { %v1328_v15 = vpop.xlane.xlu1 %1327  ;;  %vm236_vm0 = vcmp.eq.s32.totalorder %v3709_v5, %v235_v48 }
 0x244   : > { %v1698_v7 = vrot.slane %v1328_v15, %v3782_v40 }
 0x246   : > { %v1699_v13 = vsel %vm1460_vm6, %v1698_v7, %v1694_v46 }
 0x247   : > { %v1352_v28 = vpop.xlane.xlu1 %1351  ;;  %v1704_v11 = vsel %vm1467_vm7, %v1703_v45, %v1699_v13  ;;  %v245_v45 = vld [vmem:[#allocation2] sm:$0x1] }
 0x248   : > { %v1737_v12 = vrot.slane %v1352_v28, %v3782_v40  ;;  %v1709_v17 = vsel %vm1474_vm8, %v1708_v8, %v1704_v11  ;;  %v3124_v40 = vmov 0.0  }
 0x249   : > { %v2605_v5 = vsel %vm236_vm0, 1.0, %v3124_v40  ;;  %v1760_v38 = vsel %vm1759_vm14, %v1709_v17, %v1758_v34 }
 0x24a   : > { %v1738_v24 = vsel %vm1460_vm6, %v1737_v12, %v1733_v47  ;;  %v239_v9 = vmul.f32 %v2605_v5, %v221_v44  ;;  %vm260_vm6 = vcmask 0  }
 0x24b   : > { %v1358_v25 = vpop.xlane.xlu1 %1357  ;;  %v1743_v43 = vsel %vm1467_vm7, %v1742_v35, %v1738_v24 }
 0x24c   : > { %v1747_v10 = vrot.slane %v1358_v25, %v3824_v30  ;;  %v241_v37 = vsel %vm240_vm2, %v239_v9, 0.0  ;;  %v226_v30 = vstv %s2603_s21 }
 0x24d   : > { %v227_v36 = vadd.s32 %v226_v30, %v3715_v62 }
 0x24e   : > { %v1748_v19 = vsel %vm1474_vm8, %v1747_v10, %v1743_v43 }
 0x24f   : > { %v1762_v55 = vsel %vm1761_vm15, %v1748_v19, %v1760_v38  ;;  %v2473_v52 = vpop.xlane.xlu1 %2472  ;;  %vm228_vm3 = vcmp.lt.s32.totalorder %v227_v36, 16 }
 0x250   : > { %v1764_v60 = vsel %vm346_vm1, %v1762_v55, 0.0  ;;  %v2474_v1 = vmul.f32 2.0, %v2473_v52  ;;  %v2604_v32 = vsel %vm228_vm3, 1.0, %v3124_v40 }
 0x251   : > { %1765 = vadd.xlane.f32.xlu1 %v1764_v60 }
 0x255   : > { %242 = vadd.xlane.f32.xlu1 %v241_v37 }
 0x2de   : > { %v1766_v23 = vpop.xlane.xlu1 %1765 }
 0x2df   : > { %v2475_v16 = vsub.f32 %v1766_v23, %v2474_v1 }
 0x2e1   : > { %v2476_v21 = vadd.f32 64.0, %v2475_v16 }
 0x2e2   : > { %v243_v20 = vpop.xlane.xlu1 %242 }
 0x2e3   : > { %v2477_v3 = vmax.f32 %v2476_v21, 0.0  ;;  %v244_v0 = vsub.f32 0.0, %v243_v20 }
 0x2e5   : > { %3021 = vrsqrt.f32 %v2477_v3  ;;  %v246_v50 = vmul.f32 %v2604_v32, %v244_v0  ;;  %vm2480_vm1 = vcmp.eq.f32.partialorder %v2477_v3, inf  ;;  %v2483_v42 = vand.u32 2147483648, %v2477_v3 }
 0x2e6   : > { %vm2482_vm5 = vcmp.eq.f32.partialorder %v2477_v3, 0.0 }
 0x2e7   : > { %v248_v51 = vsel %vm247_vm4, %v246_v50, 0.0 }
 0x2e8   : > { %249 = vadd.xlane.f32.xlu1 %v248_v51 }
 0x2ef   : > { %v3022_v57 = vpop.eup %3021 }
 0x2f0   : > { %v2479_v58 = vmul.f32 %v3022_v57, %v2477_v3 }
 0x2f2   : > { %v2481_v54 = vsel %vm2480_vm1, %v2477_v3, %v2479_v58 }
 0x2f3   : > { %v2484_v62 = vsel %vm2482_vm5, %v2483_v42, %v2481_v54 }
 0x2f4   : > { %v2486_v31 = vmul.f32 %v2604_v32, %v2484_v62 }
 0x2f6   : > { %v2487_v41 = vsel %vm247_vm4, %v2486_v31, 0.0 }
 0x2f7   : > { %2488 = vadd.xlane.f32.xlu1 %v2487_v41 }
 0x375   : > { %v250_v14 = vpop.xlane.xlu1 %249 }
 0x376   : > { %v251_v22 = vrot.slane %v250_v14, 4 }
 0x378   : > { %v252_v39 = vadd.f32 %v251_v22, %v250_v14 }
 0x37a   : > { %v253_v4 = vrot.slane %v252_v39, 2 }
 0x37c   : > { %v254_v15 = vadd.f32 %v253_v4, %v252_v39 }
 0x37e   : > { %v255_v56 = vrot.slane %v254_v15, 1 }
 0x380   : > { %v256_v59 = vadd.f32 %v255_v56, %v254_v15 }
 0x382   : > { %2901 = vpush %v256_v59 }
 0x384   : > { %v2489_v26 = vpop.xlane.xlu1 %2488 }
 0x385   : > { %v2490_v7 = vrot.slane %v2489_v26, 4 }
 0x387   : > { %v2491_v33 = vadd.f32 %v2490_v7, %v2489_v26 }
 0x389   : > { %v2492_v46 = vrot.slane %v2491_v33, 2 }
 0x38b   : > { %v2493_v29 = vadd.f32 %v2492_v46, %v2491_v33 }
 0x38d   : > { %v2494_v48 = vrot.slane %v2493_v29, 1 }
 0x38f   : > { %v2495_v61 = vadd.f32 %v2494_v48, %v2493_v29 }
 0x391   : > { %2903 = vpush %v2495_v61 }
 0x3b3   : > { %s2902_s8 = spop %2901 }
 0x3b4   : > { %v258_v63 = vstv %s2902_s8 }
 0x3b5   : > { %v259_v13 = vadd.f32 %v258_v63, %v245_v45 }
 0x3b7   : > { %261 = vst.msk [vmem:[#allocation2] sm:$0x1] %vm260_vm6, %v259_v13 }
 0x3be   : > { %v2504_v2 = vld [vmem:[#allocation2] sm:$0x1] (!%p2670_p7) }
 0x3c0   : > { %2503 = sbr.rel (%p2670_p7) target bundleno = 981 (0x3d5), region = 44 }
 0x3c2   : > { %s2904_s9 = spop %2903 }
 0x3c3   : > { %v2497_v49 = vstv %s2904_s9 }
 0x3c4   : > { %v2498_v28 = vadd.f32 %v2497_v49, %v2485_v6 }
 0x3c6   : > { %2499 = vst.msk [vmem:[#allocation3] sm:$0x1] %vm260_vm6, %v2498_v28 }
 0x3cd   : > { %v2505_v11 = vld [vmem:[#allocation3] sm:$0x1] }
 0x3ce   : > { %v2506_v12 = vmul.f32 0.001, %v2505_v11 }
 0x3d0   : > { %v2507_v27 = vadd.f32 %v2506_v12, %v2504_v2 }
 0x3d2   : > { %v2508_v47 = vmul.f32 0.0625, %v2507_v27 }
 0x3d4   : > { %2509 = vst.msk [vmem:[#allocation7] sm:$0x1] %vm260_vm6, %v2508_v47 }
 0x3d5 PF: > { %p2916_p4 = scmp.eq.s32.totalorder %s3165_s16, 1  ;;  %s3125_s10 = smov [#allocation7]  }
 0x3d6   : > { %s2517_s11 = sshll.u32 %s3125_s10, 4  ;;  %s2518_s11 = int_to_ptr.vmem [resolvable:$true] %s2517_s11 }
 0x3d7   : > { %s3053_s12 = scalar_lea.vmem %s2518_s11, 16  ;;  %s3059_s18 = scalar_lea.vmem %s2518_s11, 32 }
 0x3d8   : > { %p3054_p5 = scmp.ne.s32.totalorder %s2518_s11, %s3053_s12  ;;  %p3060_p12 = scmp.lt.s32.totalorder %s2518_s11, %s2518_s11 }
 0x3d9   : > { %p3061_p0 = scmp.lt.s32.totalorder %s3059_s18, %s3053_s12 }
 0x3da   : > { %p3055_p6 = pnand %p3054_p5, %p2916_p4 }
 0x3db   : > { %p3062_p1 = por %p3061_p0, %p3060_p12 }
 0x3dc   : > { %p3056_p10 = pneg %p3055_p6 }
 0x3de   : > { %p3063_p2 = pnand %p3062_p1, %p3056_p10 }
 0x3e0   : > { %3066 = shalt.err (!%p3063_p2)
}
 0x3e1   : > { %s3067_s23 = scalar_lea.hbm %s4229_s3, 16 }
 0x3e2   : > { %p3068_p11 = scmp.ne.s32.totalorder %s4229_s3, %s3067_s23  ;;  %p3073_p9 = scmp.lt.u32.totalorder %s3067_s23, %s4229_s3 }
 0x3e4   : > { %p3069_p13 = pnand %p3068_p11, %p2916_p4 }
 0x3e6   : > { %p3070_p3 = pneg %p3069_p13 }
 0x3e8   : > { %p3075_p8 = pnand %p3073_p9, %p3070_p3 }
 0x3ea   : > { %3078 = shalt.err (!%p3075_p8)
}
 0x3eb   : > { %2908 = dma.vmem_to_hbm [thread:$0]  (%p2916_p4), %s2518_s11, 16, %s4229_s3, [#allocation6]  }
 0x3ec   : > { %3100 = dma.done.wait (%p2916_p4), [#allocation6], 16  }
 0x3ed   : > { %3102 = vsyncadd (%p2916_p4), [#allocation6], 4294967280 }
 0x3ee PF: > { %p14_p7 = scmp.ge.s32.totalorder %s3168_s17, 4   ;;  %s4233_s12 = smov %s3109_s13 }
 0x3ef   : > { %s4234_s13 = smov %s3113_s14  ;;  %s4235_s14 = smov %s3178_s20 }
 0x3f0   : > { %s4236_s15 = smov %s3168_s17  ;;  %16 = sbr.rel (!%p14_p7) target bundleno = 4 (0x4), region = 83 }
 0x3f7   :  { %2530 = vsyncpa [#allocation5], 1 }
 0x3f8   :  { %2532 = vsyncpa [#allocation5 + $0x1], 1 }
 0x3f9   :  { %2533 = vsyncpa [#allocation6], 1 }
 0x3fa   :  { %2535 = vsyncpa [#allocation6 + $0x1], 1 }

</bundles_post_ra>
